<compile_context>
chip_gen: v7x
topology: tpu7x:2x2x1
jax: 0.10.0
libtpu: 0.0.40
codegen_flags: <defaults>
</compile_context>

<pallas_src>
import math
import functools

import jax
import jax.numpy as jnp
from jax import lax
from jax.experimental import pallas as pl
from jax.experimental.pallas import tpu as pltpu


NEG_LARGE = -1e30  # additive mask value (avoid finfo.min in additive form)


def full_attention_kernel(x_ref, mask_ref, wq_ref, bq_ref, wkt_ref, bkt_ref,
                          wv_ref, bv_ref, wp_ref, bp_ref,
                          y_ref, attm_ref,
                          q_s, k_s, v_s, y_s,
                          *, n_head, tile_t):
    T = x_ref.shape[1]
    C = x_ref.shape[2]
    hd = C // n_head
    n_chunks = T // tile_t
    qt = pl.program_id(1)

    # ---- Per-batch QKV pass (qt == 0): chunked over T, per head, written
    # straight into head-major VMEM caches (no (T, 3C) f32 intermediate). ----
    @pl.when(qt == 0)
    def _():
        for c in range(n_chunks):                 # static unroll (chunk offsets static)
            r0 = c * tile_t
            xc = x_ref[0, r0:r0 + tile_t, :]      # (tile_t, C) bf16
            for h in range(n_head):               # static unroll
                # Q (scale already folded into wq/bq host-side).
                qh = jnp.dot(xc, wq_ref[h], preferred_element_type=jnp.float32)
                q_s[h, r0:r0 + tile_t, :] = (qh + bq_ref[h]).astype(jnp.bfloat16)
                # V
                vh = jnp.dot(xc, wv_ref[h], preferred_element_type=jnp.float32)
                v_s[h, r0:r0 + tile_t, :] = (vh + bv_ref[h]).astype(jnp.bfloat16)
                # K cached pre-transposed (hd, T): NT dot with the (hd, C) weight as lhs.
                kt = lax.dot_general(wkt_ref[h], xc, (((1,), (1,)), ((), ())),
                                     preferred_element_type=jnp.float32)   # (hd, tile_t)
                k_s[h, :, r0:r0 + tile_t] = (kt + bkt_ref[h]).astype(jnp.bfloat16)

    # ---- Per query tile ----
    row0 = pl.multiple_of(qt * tile_t, tile_t)
    m = mask_ref[0]                                            # (1, T) f32, 1.0 = masked key
    # Hoisted broadcasts (JAX does not CSE broadcast_in_dim across head iterations).
    mask_add = jnp.broadcast_to(m * jnp.float32(NEG_LARGE), (tile_t, T))
    keep = jnp.broadcast_to(m <= 0.5, (tile_t, T))

    for h in range(n_head):                                    # static unroll
        qh = q_s[h, pl.ds(row0, tile_t), :]                    # (tile_t, hd) bf16, pre-scaled
        att = jnp.dot(qh, k_s[h],
                      preferred_element_type=jnp.float32)      # (tile_t, T) f32
        att = att + mask_add
        att = att - jnp.max(att, axis=-1, keepdims=True)
        att = jnp.exp(att)
        # Exact normalization (att_mean is user-visible); divide only the (tile_t,1) sums.
        att = att * (jnp.float32(1.0) / jnp.sum(att, axis=-1, keepdims=True))
        att = jnp.where(keep, att, 0.0)                        # exact zeros on masked keys
        # TODO(synk): attn_drop / resid_drop are identity here (eval-mode dropout).

        # Accumulate raw att; scale by 1/n_head once after the loop.
        if h == 0:
            attm_ref[0] = att
        else:
            attm_ref[0] += att

        yh = jnp.dot(att.astype(jnp.bfloat16), v_s[h],
                     preferred_element_type=jnp.float32)       # (tile_t, hd)
        # Concatenate heads along lanes in VMEM scratch (static column slot).
        y_s[:, h * hd:(h + 1) * hd] = yh.astype(jnp.bfloat16)

    attm_ref[0] = attm_ref[0] * jnp.float32(1.0 / n_head)
    # Single fused output projection: full-depth K=C matmul + one store.
    y_ref[0] = jnp.dot(y_s[...], wp_ref[...],
                       preferred_element_type=jnp.float32) + bp_ref[...]


def _chip_tile_cap():
    """tile_t cap: 128 on v5e (128-tall MXU), 256 on v6e/v7x."""
    try:
        info = pltpu.get_tpu_info()
        ver = str(getattr(info, "chip_version", getattr(info, "version", ""))).lower()
        if "v5" in ver or "5e" in ver or "5lite" in ver:
            return 128
    except Exception:
        pass
    return 256


def _pick_tile_t(T, cap):
    """Largest power-of-two tile (<= cap) dividing T; full T if not 8-aligned."""
    if T % 8 != 0:
        return T
    t = 8
    while t * 2 <= min(cap, T) and T % (t * 2) == 0:
        t *= 2
    return t


def _vmem_limit_bytes(T, C, tile_t):
    """Explicit scoped-VMEM budget for this kernel's resident footprint."""
    bf16, f32 = 2, 4
    est = (
        3 * T * C * bf16            # q / k^T / v head-major scratch caches
        + tile_t * C * bf16         # per-tile y_s scratch
        + 2 * T * C * bf16          # x block (double-buffered)
        + 2 * T * f32               # mask block
        + 2 * 4 * C * C * bf16      # wq/wk/wv/wp weights (double-buffered by the pipeline)
        + 2 * 4 * C * f32           # biases
        + 2 * tile_t * C * f32      # y out block (double-buffered)
        + 2 * tile_t * T * f32      # att_mean out block (double-buffered)
    )
    est = int(est * 1.5) + (4 << 20)           # headroom for compiler temporaries
    return max(32 << 20, min(est, 100 << 20))  # note: v7x physical ceiling is 64 MiB/TC


def full_attention(x, params, n_head, mask=None):
    B, T, C = x.shape
    assert C % n_head == 0
    hd = C // n_head
    wq, bq, wk, bk, wv, bv, wp, bp = params      # weights (in, out); biases (1, C)
    scale = 1.0 / math.sqrt(hd)

    # Host-side packing (head-major, bf16 weights, 1/sqrt(hd) folded into Q).
    wq_h = (wq * scale).reshape(C, n_head, hd).transpose(1, 0, 2).astype(jnp.bfloat16)  # (nh, C, hd)
    bq_h = (bq * scale).reshape(1, n_head, hd).transpose(1, 0, 2).astype(jnp.float32)   # (nh, 1, hd)
    wv_h = wv.reshape(C, n_head, hd).transpose(1, 0, 2).astype(jnp.bfloat16)            # (nh, C, hd)
    bv_h = bv.reshape(1, n_head, hd).transpose(1, 0, 2).astype(jnp.float32)             # (nh, 1, hd)
    # K weight stored (head, hd, C) so the kernel produces K^T (hd, T) directly.
    wkT_h = wk.reshape(C, n_head, hd).transpose(1, 2, 0).astype(jnp.bfloat16)           # (nh, hd, C)
    bkT_h = bk.reshape(1, n_head, hd).transpose(1, 2, 0).astype(jnp.float32)            # (nh, hd, 1)
    wp_b = wp.astype(jnp.bfloat16)                                                      # (C, C)
    bp_f = bp.astype(jnp.float32)                                                       # (1, C)

    x_bf = x.astype(jnp.bfloat16)                # bf16 HBM read / VMEM block

    if mask is None:
        # Matches PyTorch default: att.new(B,1,T).zero_() == 1 -> nothing masked.
        mask_f = jnp.zeros((B, 1, T), jnp.float32)
    else:
        mask_f = mask.astype(jnp.float32).reshape(B, 1, T)       # 1.0 = masked

    tile_t = _pick_tile_t(T, _chip_tile_cap())
    assert T % tile_t == 0
    nqt = T // tile_t

    kernel = functools.partial(full_attention_kernel, n_head=n_head, tile_t=tile_t)

    y, att_mean = pl.pallas_call(
        kernel,
        out_shape=(jax.ShapeDtypeStruct((B, T, C), jnp.float32),
                   jax.ShapeDtypeStruct((B, T, T), jnp.float32)),
        grid_spec=pltpu.PrefetchScalarGridSpec(
            num_scalar_prefetch=0,
            grid=(B, nqt),
            in_specs=[
                pl.BlockSpec((1, T, C), lambda b, q: (b, 0, 0)),         # x (bf16, full seq)
                pl.BlockSpec((1, 1, T), lambda b, q: (b, 0, 0)),         # mask
                pl.BlockSpec((n_head, C, hd), lambda b, q: (0, 0, 0)),   # Wq (scaled, head-major)
                pl.BlockSpec((n_head, 1, hd), lambda b, q: (0, 0, 0)),   # bq (scaled)
                pl.BlockSpec((n_head, hd, C), lambda b, q: (0, 0, 0)),   # Wk^T (head-major)
                pl.BlockSpec((n_head, hd, 1), lambda b, q: (0, 0, 0)),   # bk^T
                pl.BlockSpec((n_head, C, hd), lambda b, q: (0, 0, 0)),   # Wv (head-major)
                pl.BlockSpec((n_head, 1, hd), lambda b, q: (0, 0, 0)),   # bv
                pl.BlockSpec((C, C), lambda b, q: (0, 0)),               # Wp (full, fused proj)
                pl.BlockSpec((1, C), lambda b, q: (0, 0)),               # bp
            ],
            out_specs=[
                pl.BlockSpec((1, tile_t, C), lambda b, q: (b, q, 0)),
                pl.BlockSpec((1, tile_t, T), lambda b, q: (b, q, 0)),
            ],
            scratch_shapes=[
                pltpu.VMEM((n_head, T, hd), jnp.bfloat16),   # Q cache (scale folded)
                pltpu.VMEM((n_head, hd, T), jnp.bfloat16),   # K^T cache
                pltpu.VMEM((n_head, T, hd), jnp.bfloat16),   # V cache
                pltpu.VMEM((tile_t, C), jnp.bfloat16),       # per-tile head-concat scratch
            ],
        ),
        compiler_params=pltpu.CompilerParams(
            dimension_semantics=("parallel", "arbitrary"),
            vmem_limit_bytes=_vmem_limit_bytes(T, C, tile_t)),
    )(x_bf, mask_f, wq_h, bq_h, wkT_h, bkT_h, wv_h, bv_h, wp_b, bp_f)
    return y, att_mean


def make_params(key, n_embd):
    """Deterministic init mimicking nn.Linear(n_embd, n_embd) shapes.

    PyTorch stores weight as (out, in) and computes x @ W.T + b; we store the
    transposed (in, out) form so the math is x @ W + b.
    """
    ks = jax.random.split(key, 8)
    bound = 1.0 / math.sqrt(n_embd)

    def lin(kw, kb):
        w = jax.random.uniform(kw, (n_embd, n_embd), jnp.float32, -bound, bound)
        b = jax.random.uniform(kb, (1, n_embd), jnp.float32, -bound, bound)
        return w, b

    wq, bq = lin(ks[0], ks[1])
    wk, bk = lin(ks[2], ks[3])
    wv, bv = lin(ks[4], ks[5])
    wp, bp = lin(ks[6], ks[7])
    return (wq, bq, wk, bk, wv, bv, wp, bp)


def reference_full_attention(x, params, n_head, mask=None):
    """Pure-JAX f32 reference mirroring the PyTorch forward (eval-mode dropout)."""
    wq, bq, wk, bk, wv, bv, wp, bp = params
    B, T, C = x.shape
    hd = C // n_head

    def heads(z):
        return z.reshape(B, T, n_head, hd).transpose(0, 2, 1, 3)  # (B, nh, T, hd)

    q = heads(x @ wq + bq)
    k = heads(x @ wk + bk)
    v = heads(x @ wv + bv)
    att = jnp.einsum('bhqd,bhkd->bhqk', q, k) / math.sqrt(hd)
    if mask is None:
        mask_b = jnp.zeros((B, 1, 1, T), bool)
    else:
        mask_b = mask.reshape(B, 1, 1, T).astype(bool)
    minv = jnp.finfo(att.dtype).min
    att = jnp.where(mask_b, minv, att)
    att = jax.nn.softmax(att, axis=-1)
    att = jnp.where(mask_b, 0.0, att)
    y = jnp.einsum('bhqk,bhkd->bhqd', att, v)
    y = y.transpose(0, 2, 1, 3).reshape(B, T, C)
    y = y @ wp + bp
    return y, att.mean(axis=1)


if __name__ == "__main__":
    B, T, C, n_head = 2, 8, 32, 4
    key = jax.random.PRNGKey(0)
    kx, kenc, kp = jax.random.split(key, 3)
    x = jax.random.normal(kx, (B, T, C), jnp.float32)
    encoder_output = jax.random.normal(kenc, (B, T, C), jnp.float32)  # unused by forward
    params = make_params(kp, C)

    # bf16 MXU inputs -> compare to f32 reference with loosened tolerances.
    # Case 1: default mask (nothing masked).
    y, att_mean = full_attention(x, params, n_head, mask=None)
    jax.block_until_ready((y, att_mean))
    y_ref, att_ref = reference_full_attention(x, params, n_head, mask=None)
    assert jnp.allclose(y, y_ref, atol=3e-2, rtol=3e-2)
    assert jnp.allclose(att_mean, att_ref, atol=1e-2, rtol=3e-2)

    # Case 2: explicit key-padding mask (last two key positions masked, True = masked).
    mask = jnp.broadcast_to(jnp.arange(T) >= T - 2, (B, 1, T))
    y_m, att_m = full_attention(x, params, n_head, mask=mask)
    jax.block_until_ready((y_m, att_m))
    y_mref, att_mref = reference_full_attention(x, params, n_head, mask=mask)
    assert jnp.allclose(y_m, y_mref, atol=3e-2, rtol=3e-2)
    assert jnp.allclose(att_m, att_mref, atol=1e-2, rtol=3e-2)

    print("KERNEL_OK")
</pallas_src>

<mosaic_0001>
module attributes {stable_mosaic.version = 11 : i64} {
  func.func @full_attention_kernel(%arg0: i32, %arg1: i32, %arg2: memref<1x8x32xbf16, #tpu.memory_space<vmem>>, %arg3: memref<1x1x8xf32, #tpu.memory_space<vmem>>, %arg4: memref<4x32x8xbf16, #tpu.memory_space<vmem>>, %arg5: memref<4x1x8xf32, #tpu.memory_space<vmem>>, %arg6: memref<4x8x32xbf16, #tpu.memory_space<vmem>>, %arg7: memref<4x8x1xf32, #tpu.memory_space<vmem>>, %arg8: memref<4x32x8xbf16, #tpu.memory_space<vmem>>, %arg9: memref<4x1x8xf32, #tpu.memory_space<vmem>>, %arg10: memref<32x32xbf16, #tpu.memory_space<vmem>>, %arg11: memref<1x32xf32, #tpu.memory_space<vmem>>, %arg12: memref<1x8x32xf32, #tpu.memory_space<vmem>>, %arg13: memref<1x8x8xf32, #tpu.memory_space<vmem>>, %arg14: memref<4x8x8xbf16, #tpu.memory_space<vmem>>, %arg15: memref<4x8x8xbf16, #tpu.memory_space<vmem>>, %arg16: memref<4x8x8xbf16, #tpu.memory_space<vmem>>, %arg17: memref<8x32xbf16, #tpu.memory_space<vmem>>) attributes {dimension_semantics = [#tpu.dimension_semantics<parallel>, #tpu.dimension_semantics<arbitrary>], iteration_bounds = array<i64: 2, 1>, scalar_prefetch = 0 : i64, scratch_operands = 4 : i64, tpu.core_type = #tpu.core_type<tc>, window_params = [{transform_indices = @transform_0, window_bounds = array<i64: 1, 8, 32>}, {transform_indices = @transform_1, window_bounds = array<i64: 1, 1, 8>}, {pipeline_mode = #tpu.pipeline_mode<synchronous>, transform_indices = @transform_2, window_bounds = array<i64: 4, 32, 8>}, {pipeline_mode = #tpu.pipeline_mode<synchronous>, transform_indices = @transform_3, window_bounds = array<i64: 4, 1, 8>}, {pipeline_mode = #tpu.pipeline_mode<synchronous>, transform_indices = @transform_4, window_bounds = array<i64: 4, 8, 32>}, {pipeline_mode = #tpu.pipeline_mode<synchronous>, transform_indices = @transform_5, window_bounds = array<i64: 4, 8, 1>}, {pipeline_mode = #tpu.pipeline_mode<synchronous>, transform_indices = @transform_6, window_bounds = array<i64: 4, 32, 8>}, {pipeline_mode = #tpu.pipeline_mode<synchronous>, transform_indices = @transform_7, window_bounds = array<i64: 4, 1, 8>}, {pipeline_mode = #tpu.pipeline_mode<synchronous>, transform_indices = @transform_8, window_bounds = array<i64: 32, 32>}, {pipeline_mode = #tpu.pipeline_mode<synchronous>, transform_indices = @transform_9, window_bounds = array<i64: 1, 32>}, {transform_indices = @transform_10, window_bounds = array<i64: 1, 8, 32>}, {transform_indices = @transform_11, window_bounds = array<i64: 1, 8, 8>}]} {
    %c0_i32 = arith.constant 0 : i32
    %0 = arith.cmpi eq, %arg1, %c0_i32 : i32
    %1 = arith.extui %0 : i1 to i32
    %c0_i32_0 = arith.constant 0 : i32
    %2 = arith.cmpi ne, %1, %c0_i32_0 : i32
    scf.if %2 {
      %c0_100 = arith.constant 0 : index
      %c0_101 = arith.constant 0 : index
      %c0_102 = arith.constant 0 : index
      %156 = vector.load %arg2[%c0_100, %c0_101, %c0_102] : memref<1x8x32xbf16, #tpu.memory_space<vmem>>, vector<1x8x32xbf16>
      %157 = vector.shape_cast %156 : vector<1x8x32xbf16> to vector<8x32xbf16>
      %c0_103 = arith.constant 0 : index
      %c0_104 = arith.constant 0 : index
      %c0_105 = arith.constant 0 : index
      %158 = vector.load %arg4[%c0_103, %c0_104, %c0_105] : memref<4x32x8xbf16, #tpu.memory_space<vmem>>, vector<1x32x8xbf16>
      %159 = vector.shape_cast %158 : vector<1x32x8xbf16> to vector<32x8xbf16>
      %cst_106 = arith.constant dense<0.000000e+00> : vector<8x8xf32>
      %160 = tpu.matmul %157, %159, %cst_106 {dimension_numbers = #tpu.dot_dimension_numbers<[1], [0], [0], [1], [0, 0, 1, 1], [], []>} : vector<8x32xbf16>, vector<32x8xbf16>, vector<8x8xf32> -> vector<8x8xf32>
      %c0_107 = arith.constant 0 : index
      %c0_108 = arith.constant 0 : index
      %c0_109 = arith.constant 0 : index
      %161 = vector.load %arg5[%c0_107, %c0_108, %c0_109] : memref<4x1x8xf32, #tpu.memory_space<vmem>>, vector<1x1x8xf32>
      %162 = vector.shape_cast %161 : vector<1x1x8xf32> to vector<1x8xf32>
      %163 = vector.broadcast %162 : vector<1x8xf32> to vector<8x8xf32>
      %164 = arith.addf %160, %163 : vector<8x8xf32>
      %165 = arith.truncf %164 : vector<8x8xf32> to vector<8x8xbf16>
      %c0_110 = arith.constant 0 : index
      %c0_111 = arith.constant 0 : index
      %c0_112 = arith.constant 0 : index
      %166 = vector.load %arg14[%c0_110, %c0_111, %c0_112] : memref<4x8x8xbf16, #tpu.memory_space<vmem>>, vector<1x8x8xbf16>
      %167 = vector.shape_cast %166 : vector<1x8x8xbf16> to vector<8x8xbf16>
      %168 = vector.shape_cast %165 : vector<8x8xbf16> to vector<1x8x8xbf16>
      tpu.vector_store %arg14[%c0_110, %c0_111, %c0_112], %168 {strides = array<i32>} : memref<4x8x8xbf16, #tpu.memory_space<vmem>>, vector<1x8x8xbf16>,
      %c0_113 = arith.constant 0 : index
      %c0_114 = arith.constant 0 : index
      %c0_115 = arith.constant 0 : index
      %169 = vector.load %arg8[%c0_113, %c0_114, %c0_115] : memref<4x32x8xbf16, #tpu.memory_space<vmem>>, vector<1x32x8xbf16>
      %170 = vector.shape_cast %169 : vector<1x32x8xbf16> to vector<32x8xbf16>
      %cst_116 = arith.constant dense<0.000000e+00> : vector<8x8xf32>
      %171 = tpu.matmul %157, %170, %cst_116 {dimension_numbers = #tpu.dot_dimension_numbers<[1], [0], [0], [1], [0, 0, 1, 1], [], []>} : vector<8x32xbf16>, vector<32x8xbf16>, vector<8x8xf32> -> vector<8x8xf32>
      %c0_117 = arith.constant 0 : index
      %c0_118 = arith.constant 0 : index
      %c0_119 = arith.constant 0 : index
      %172 = vector.load %arg9[%c0_117, %c0_118, %c0_119] : memref<4x1x8xf32, #tpu.memory_space<vmem>>, vector<1x1x8xf32>
      %173 = vector.shape_cast %172 : vector<1x1x8xf32> to vector<1x8xf32>
      %174 = vector.broadcast %173 : vector<1x8xf32> to vector<8x8xf32>
      %175 = arith.addf %171, %174 : vector<8x8xf32>
      %176 = arith.truncf %175 : vector<8x8xf32> to vector<8x8xbf16>
      %c0_120 = arith.constant 0 : index
      %c0_121 = arith.constant 0 : index
      %c0_122 = arith.constant 0 : index
      %177 = vector.load %arg16[%c0_120, %c0_121, %c0_122] : memref<4x8x8xbf16, #tpu.memory_space<vmem>>, vector<1x8x8xbf16>
      %178 = vector.shape_cast %177 : vector<1x8x8xbf16> to vector<8x8xbf16>
      %179 = vector.shape_cast %176 : vector<8x8xbf16> to vector<1x8x8xbf16>
      tpu.vector_store %arg16[%c0_120, %c0_121, %c0_122], %179 {strides = array<i32>} : memref<4x8x8xbf16, #tpu.memory_space<vmem>>, vector<1x8x8xbf16>,
      %c0_123 = arith.constant 0 : index
      %c0_124 = arith.constant 0 : index
      %c0_125 = arith.constant 0 : index
      %180 = vector.load %arg6[%c0_123, %c0_124, %c0_125] : memref<4x8x32xbf16, #tpu.memory_space<vmem>>, vector<1x8x32xbf16>
      %181 = vector.shape_cast %180 : vector<1x8x32xbf16> to vector<8x32xbf16>
      %cst_126 = arith.constant dense<0.000000e+00> : vector<8x8xf32>
      %182 = tpu.matmul %181, %157, %cst_126 {dimension_numbers = #tpu.dot_dimension_numbers<[1], [1], [0], [0], [0, 0, 1, 0], [], []>} : vector<8x32xbf16>, vector<8x32xbf16>, vector<8x8xf32> -> vector<8x8xf32>
      %c0_127 = arith.constant 0 : index
      %c0_128 = arith.constant 0 : index
      %c0_129 = arith.constant 0 : index
      %183 = vector.load %arg7[%c0_127, %c0_128, %c0_129] : memref<4x8x1xf32, #tpu.memory_space<vmem>>, vector<1x8x1xf32>
      %184 = vector.shape_cast %183 : vector<1x8x1xf32> to vector<8x1xf32>
      %185 = vector.broadcast %184 : vector<8x1xf32> to vector<8x8xf32>
      %186 = arith.addf %182, %185 : vector<8x8xf32>
      %187 = arith.truncf %186 : vector<8x8xf32> to vector<8x8xbf16>
      %c0_130 = arith.constant 0 : index
      %c0_131 = arith.constant 0 : index
      %c0_132 = arith.constant 0 : index
      %188 = vector.load %arg15[%c0_130, %c0_131, %c0_132] : memref<4x8x8xbf16, #tpu.memory_space<vmem>>, vector<1x8x8xbf16>
      %189 = vector.shape_cast %188 : vector<1x8x8xbf16> to vector<8x8xbf16>
      %190 = vector.shape_cast %187 : vector<8x8xbf16> to vector<1x8x8xbf16>
      tpu.vector_store %arg15[%c0_130, %c0_131, %c0_132], %190 {strides = array<i32>} : memref<4x8x8xbf16, #tpu.memory_space<vmem>>, vector<1x8x8xbf16>,
      %c1_133 = arith.constant 1 : index
      %c0_134 = arith.constant 0 : index
      %c0_135 = arith.constant 0 : index
      %191 = vector.load %arg4[%c1_133, %c0_134, %c0_135] : memref<4x32x8xbf16, #tpu.memory_space<vmem>>, vector<1x32x8xbf16>
      %192 = vector.shape_cast %191 : vector<1x32x8xbf16> to vector<32x8xbf16>
      %cst_136 = arith.constant dense<0.000000e+00> : vector<8x8xf32>
      %193 = tpu.matmul %157, %192, %cst_136 {dimension_numbers = #tpu.dot_dimension_numbers<[1], [0], [0], [1], [0, 0, 1, 1], [], []>} : vector<8x32xbf16>, vector<32x8xbf16>, vector<8x8xf32> -> vector<8x8xf32>
      %c1_137 = arith.constant 1 : index
      %c0_138 = arith.constant 0 : index
      %c0_139 = arith.constant 0 : index
      %194 = vector.load %arg5[%c1_137, %c0_138, %c0_139] : memref<4x1x8xf32, #tpu.memory_space<vmem>>, vector<1x1x8xf32>
      %195 = vector.shape_cast %194 : vector<1x1x8xf32> to vector<1x8xf32>
      %196 = vector.broadcast %195 : vector<1x8xf32> to vector<8x8xf32>
      %197 = arith.addf %193, %196 : vector<8x8xf32>
      %198 = arith.truncf %197 : vector<8x8xf32> to vector<8x8xbf16>
      %c1_140 = arith.constant 1 : index
      %c0_141 = arith.constant 0 : index
      %c0_142 = arith.constant 0 : index
      %199 = vector.load %arg14[%c1_140, %c0_141, %c0_142] : memref<4x8x8xbf16, #tpu.memory_space<vmem>>, vector<1x8x8xbf16>
      %200 = vector.shape_cast %199 : vector<1x8x8xbf16> to vector<8x8xbf16>
      %201 = vector.shape_cast %198 : vector<8x8xbf16> to vector<1x8x8xbf16>
      tpu.vector_store %arg14[%c1_140, %c0_141, %c0_142], %201 {strides = array<i32>} : memref<4x8x8xbf16, #tpu.memory_space<vmem>>, vector<1x8x8xbf16>,
      %c1_143 = arith.constant 1 : index
      %c0_144 = arith.constant 0 : index
      %c0_145 = arith.constant 0 : index
      %202 = vector.load %arg8[%c1_143, %c0_144, %c0_145] : memref<4x32x8xbf16, #tpu.memory_space<vmem>>, vector<1x32x8xbf16>
      %203 = vector.shape_cast %202 : vector<1x32x8xbf16> to vector<32x8xbf16>
      %cst_146 = arith.constant dense<0.000000e+00> : vector<8x8xf32>
      %204 = tpu.matmul %157, %203, %cst_146 {dimension_numbers = #tpu.dot_dimension_numbers<[1], [0], [0], [1], [0, 0, 1, 1], [], []>} : vector<8x32xbf16>, vector<32x8xbf16>, vector<8x8xf32> -> vector<8x8xf32>
      %c1_147 = arith.constant 1 : index
      %c0_148 = arith.constant 0 : index
      %c0_149 = arith.constant 0 : index
      %205 = vector.load %arg9[%c1_147, %c0_148, %c0_149] : memref<4x1x8xf32, #tpu.memory_space<vmem>>, vector<1x1x8xf32>
      %206 = vector.shape_cast %205 : vector<1x1x8xf32> to vector<1x8xf32>
      %207 = vector.broadcast %206 : vector<1x8xf32> to vector<8x8xf32>
      %208 = arith.addf %204, %207 : vector<8x8xf32>
      %209 = arith.truncf %208 : vector<8x8xf32> to vector<8x8xbf16>
      %c1_150 = arith.constant 1 : index
      %c0_151 = arith.constant 0 : index
      %c0_152 = arith.constant 0 : index
      %210 = vector.load %arg16[%c1_150, %c0_151, %c0_152] : memref<4x8x8xbf16, #tpu.memory_space<vmem>>, vector<1x8x8xbf16>
      %211 = vector.shape_cast %210 : vector<1x8x8xbf16> to vector<8x8xbf16>
      %212 = vector.shape_cast %209 : vector<8x8xbf16> to vector<1x8x8xbf16>
      tpu.vector_store %arg16[%c1_150, %c0_151, %c0_152], %212 {strides = array<i32>} : memref<4x8x8xbf16, #tpu.memory_space<vmem>>, vector<1x8x8xbf16>,
      %c1_153 = arith.constant 1 : index
      %c0_154 = arith.constant 0 : index
      %c0_155 = arith.constant 0 : index
      %213 = vector.load %arg6[%c1_153, %c0_154, %c0_155] : memref<4x8x32xbf16, #tpu.memory_space<vmem>>, vector<1x8x32xbf16>
      %214 = vector.shape_cast %213 : vector<1x8x32xbf16> to vector<8x32xbf16>
      %cst_156 = arith.constant dense<0.000000e+00> : vector<8x8xf32>
      %215 = tpu.matmul %214, %157, %cst_156 {dimension_numbers = #tpu.dot_dimension_numbers<[1], [1], [0], [0], [0, 0, 1, 0], [], []>} : vector<8x32xbf16>, vector<8x32xbf16>, vector<8x8xf32> -> vector<8x8xf32>
      %c1_157 = arith.constant 1 : index
      %c0_158 = arith.constant 0 : index
      %c0_159 = arith.constant 0 : index
      %216 = vector.load %arg7[%c1_157, %c0_158, %c0_159] : memref<4x8x1xf32, #tpu.memory_space<vmem>>, vector<1x8x1xf32>
      %217 = vector.shape_cast %216 : vector<1x8x1xf32> to vector<8x1xf32>
      %218 = vector.broadcast %217 : vector<8x1xf32> to vector<8x8xf32>
      %219 = arith.addf %215, %218 : vector<8x8xf32>
      %220 = arith.truncf %219 : vector<8x8xf32> to vector<8x8xbf16>
      %c1_160 = arith.constant 1 : index
      %c0_161 = arith.constant 0 : index
      %c0_162 = arith.constant 0 : index
      %221 = vector.load %arg15[%c1_160, %c0_161, %c0_162] : memref<4x8x8xbf16, #tpu.memory_space<vmem>>, vector<1x8x8xbf16>
      %222 = vector.shape_cast %221 : vector<1x8x8xbf16> to vector<8x8xbf16>
      %223 = vector.shape_cast %220 : vector<8x8xbf16> to vector<1x8x8xbf16>
      tpu.vector_store %arg15[%c1_160, %c0_161, %c0_162], %223 {strides = array<i32>} : memref<4x8x8xbf16, #tpu.memory_space<vmem>>, vector<1x8x8xbf16>,
      %c2_163 = arith.constant 2 : index
      %c0_164 = arith.constant 0 : index
      %c0_165 = arith.constant 0 : index
      %224 = vector.load %arg4[%c2_163, %c0_164, %c0_165] : memref<4x32x8xbf16, #tpu.memory_space<vmem>>, vector<1x32x8xbf16>
      %225 = vector.shape_cast %224 : vector<1x32x8xbf16> to vector<32x8xbf16>
      %cst_166 = arith.constant dense<0.000000e+00> : vector<8x8xf32>
      %226 = tpu.matmul %157, %225, %cst_166 {dimension_numbers = #tpu.dot_dimension_numbers<[1], [0], [0], [1], [0, 0, 1, 1], [], []>} : vector<8x32xbf16>, vector<32x8xbf16>, vector<8x8xf32> -> vector<8x8xf32>
      %c2_167 = arith.constant 2 : index
      %c0_168 = arith.constant 0 : index
      %c0_169 = arith.constant 0 : index
      %227 = vector.load %arg5[%c2_167, %c0_168, %c0_169] : memref<4x1x8xf32, #tpu.memory_space<vmem>>, vector<1x1x8xf32>
      %228 = vector.shape_cast %227 : vector<1x1x8xf32> to vector<1x8xf32>
      %229 = vector.broadcast %228 : vector<1x8xf32> to vector<8x8xf32>
      %230 = arith.addf %226, %229 : vector<8x8xf32>
      %231 = arith.truncf %230 : vector<8x8xf32> to vector<8x8xbf16>
      %c2_170 = arith.constant 2 : index
      %c0_171 = arith.constant 0 : index
      %c0_172 = arith.constant 0 : index
      %232 = vector.load %arg14[%c2_170, %c0_171, %c0_172] : memref<4x8x8xbf16, #tpu.memory_space<vmem>>, vector<1x8x8xbf16>
      %233 = vector.shape_cast %232 : vector<1x8x8xbf16> to vector<8x8xbf16>
      %234 = vector.shape_cast %231 : vector<8x8xbf16> to vector<1x8x8xbf16>
      tpu.vector_store %arg14[%c2_170, %c0_171, %c0_172], %234 {strides = array<i32>} : memref<4x8x8xbf16, #tpu.memory_space<vmem>>, vector<1x8x8xbf16>,
      %c2_173 = arith.constant 2 : index
      %c0_174 = arith.constant 0 : index
      %c0_175 = arith.constant 0 : index
      %235 = vector.load %arg8[%c2_173, %c0_174, %c0_175] : memref<4x32x8xbf16, #tpu.memory_space<vmem>>, vector<1x32x8xbf16>
      %236 = vector.shape_cast %235 : vector<1x32x8xbf16> to vector<32x8xbf16>
      %cst_176 = arith.constant dense<0.000000e+00> : vector<8x8xf32>
      %237 = tpu.matmul %157, %236, %cst_176 {dimension_numbers = #tpu.dot_dimension_numbers<[1], [0], [0], [1], [0, 0, 1, 1], [], []>} : vector<8x32xbf16>, vector<32x8xbf16>, vector<8x8xf32> -> vector<8x8xf32>
      %c2_177 = arith.constant 2 : index
      %c0_178 = arith.constant 0 : index
      %c0_179 = arith.constant 0 : index
      %238 = vector.load %arg9[%c2_177, %c0_178, %c0_179] : memref<4x1x8xf32, #tpu.memory_space<vmem>>, vector<1x1x8xf32>
      %239 = vector.shape_cast %238 : vector<1x1x8xf32> to vector<1x8xf32>
      %240 = vector.broadcast %239 : vector<1x8xf32> to vector<8x8xf32>
      %241 = arith.addf %237, %240 : vector<8x8xf32>
      %242 = arith.truncf %241 : vector<8x8xf32> to vector<8x8xbf16>
      %c2_180 = arith.constant 2 : index
      %c0_181 = arith.constant 0 : index
      %c0_182 = arith.constant 0 : index
      %243 = vector.load %arg16[%c2_180, %c0_181, %c0_182] : memref<4x8x8xbf16, #tpu.memory_space<vmem>>, vector<1x8x8xbf16>
      %244 = vector.shape_cast %243 : vector<1x8x8xbf16> to vector<8x8xbf16>
      %245 = vector.shape_cast %242 : vector<8x8xbf16> to vector<1x8x8xbf16>
      tpu.vector_store %arg16[%c2_180, %c0_181, %c0_182], %245 {strides = array<i32>} : memref<4x8x8xbf16, #tpu.memory_space<vmem>>, vector<1x8x8xbf16>,
      %c2_183 = arith.constant 2 : index
      %c0_184 = arith.constant 0 : index
      %c0_185 = arith.constant 0 : index
      %246 = vector.load %arg6[%c2_183, %c0_184, %c0_185] : memref<4x8x32xbf16, #tpu.memory_space<vmem>>, vector<1x8x32xbf16>
      %247 = vector.shape_cast %246 : vector<1x8x32xbf16> to vector<8x32xbf16>
      %cst_186 = arith.constant dense<0.000000e+00> : vector<8x8xf32>
      %248 = tpu.matmul %247, %157, %cst_186 {dimension_numbers = #tpu.dot_dimension_numbers<[1], [1], [0], [0], [0, 0, 1, 0], [], []>} : vector<8x32xbf16>, vector<8x32xbf16>, vector<8x8xf32> -> vector<8x8xf32>
      %c2_187 = arith.constant 2 : index
      %c0_188 = arith.constant 0 : index
      %c0_189 = arith.constant 0 : index
      %249 = vector.load %arg7[%c2_187, %c0_188, %c0_189] : memref<4x8x1xf32, #tpu.memory_space<vmem>>, vector<1x8x1xf32>
      %250 = vector.shape_cast %249 : vector<1x8x1xf32> to vector<8x1xf32>
      %251 = vector.broadcast %250 : vector<8x1xf32> to vector<8x8xf32>
      %252 = arith.addf %248, %251 : vector<8x8xf32>
      %253 = arith.truncf %252 : vector<8x8xf32> to vector<8x8xbf16>
      %c2_190 = arith.constant 2 : index
      %c0_191 = arith.constant 0 : index
      %c0_192 = arith.constant 0 : index
      %254 = vector.load %arg15[%c2_190, %c0_191, %c0_192] : memref<4x8x8xbf16, #tpu.memory_space<vmem>>, vector<1x8x8xbf16>
      %255 = vector.shape_cast %254 : vector<1x8x8xbf16> to vector<8x8xbf16>
      %256 = vector.shape_cast %253 : vector<8x8xbf16> to vector<1x8x8xbf16>
      tpu.vector_store %arg15[%c2_190, %c0_191, %c0_192], %256 {strides = array<i32>} : memref<4x8x8xbf16, #tpu.memory_space<vmem>>, vector<1x8x8xbf16>,
      %c3_193 = arith.constant 3 : index
      %c0_194 = arith.constant 0 : index
      %c0_195 = arith.constant 0 : index
      %257 = vector.load %arg4[%c3_193, %c0_194, %c0_195] : memref<4x32x8xbf16, #tpu.memory_space<vmem>>, vector<1x32x8xbf16>
      %258 = vector.shape_cast %257 : vector<1x32x8xbf16> to vector<32x8xbf16>
      %cst_196 = arith.constant dense<0.000000e+00> : vector<8x8xf32>
      %259 = tpu.matmul %157, %258, %cst_196 {dimension_numbers = #tpu.dot_dimension_numbers<[1], [0], [0], [1], [0, 0, 1, 1], [], []>} : vector<8x32xbf16>, vector<32x8xbf16>, vector<8x8xf32> -> vector<8x8xf32>
      %c3_197 = arith.constant 3 : index
      %c0_198 = arith.constant 0 : index
      %c0_199 = arith.constant 0 : index
      %260 = vector.load %arg5[%c3_197, %c0_198, %c0_199] : memref<4x1x8xf32, #tpu.memory_space<vmem>>, vector<1x1x8xf32>
      %261 = vector.shape_cast %260 : vector<1x1x8xf32> to vector<1x8xf32>
      %262 = vector.broadcast %261 : vector<1x8xf32> to vector<8x8xf32>
      %263 = arith.addf %259, %262 : vector<8x8xf32>
      %264 = arith.truncf %263 : vector<8x8xf32> to vector<8x8xbf16>
      %c3_200 = arith.constant 3 : index
      %c0_201 = arith.constant 0 : index
      %c0_202 = arith.constant 0 : index
      %265 = vector.load %arg14[%c3_200, %c0_201, %c0_202] : memref<4x8x8xbf16, #tpu.memory_space<vmem>>, vector<1x8x8xbf16>
      %266 = vector.shape_cast %265 : vector<1x8x8xbf16> to vector<8x8xbf16>
      %267 = vector.shape_cast %264 : vector<8x8xbf16> to vector<1x8x8xbf16>
      tpu.vector_store %arg14[%c3_200, %c0_201, %c0_202], %267 {strides = array<i32>} : memref<4x8x8xbf16, #tpu.memory_space<vmem>>, vector<1x8x8xbf16>,
      %c3_203 = arith.constant 3 : index
      %c0_204 = arith.constant 0 : index
      %c0_205 = arith.constant 0 : index
      %268 = vector.load %arg8[%c3_203, %c0_204, %c0_205] : memref<4x32x8xbf16, #tpu.memory_space<vmem>>, vector<1x32x8xbf16>
      %269 = vector.shape_cast %268 : vector<1x32x8xbf16> to vector<32x8xbf16>
      %cst_206 = arith.constant dense<0.000000e+00> : vector<8x8xf32>
      %270 = tpu.matmul %157, %269, %cst_206 {dimension_numbers = #tpu.dot_dimension_numbers<[1], [0], [0], [1], [0, 0, 1, 1], [], []>} : vector<8x32xbf16>, vector<32x8xbf16>, vector<8x8xf32> -> vector<8x8xf32>
      %c3_207 = arith.constant 3 : index
      %c0_208 = arith.constant 0 : index
      %c0_209 = arith.constant 0 : index
      %271 = vector.load %arg9[%c3_207, %c0_208, %c0_209] : memref<4x1x8xf32, #tpu.memory_space<vmem>>, vector<1x1x8xf32>
      %272 = vector.shape_cast %271 : vector<1x1x8xf32> to vector<1x8xf32>
      %273 = vector.broadcast %272 : vector<1x8xf32> to vector<8x8xf32>
      %274 = arith.addf %270, %273 : vector<8x8xf32>
      %275 = arith.truncf %274 : vector<8x8xf32> to vector<8x8xbf16>
      %c3_210 = arith.constant 3 : index
      %c0_211 = arith.constant 0 : index
      %c0_212 = arith.constant 0 : index
      %276 = vector.load %arg16[%c3_210, %c0_211, %c0_212] : memref<4x8x8xbf16, #tpu.memory_space<vmem>>, vector<1x8x8xbf16>
      %277 = vector.shape_cast %276 : vector<1x8x8xbf16> to vector<8x8xbf16>
      %278 = vector.shape_cast %275 : vector<8x8xbf16> to vector<1x8x8xbf16>
      tpu.vector_store %arg16[%c3_210, %c0_211, %c0_212], %278 {strides = array<i32>} : memref<4x8x8xbf16, #tpu.memory_space<vmem>>, vector<1x8x8xbf16>,
      %c3_213 = arith.constant 3 : index
      %c0_214 = arith.constant 0 : index
      %c0_215 = arith.constant 0 : index
      %279 = vector.load %arg6[%c3_213, %c0_214, %c0_215] : memref<4x8x32xbf16, #tpu.memory_space<vmem>>, vector<1x8x32xbf16>
      %280 = vector.shape_cast %279 : vector<1x8x32xbf16> to vector<8x32xbf16>
      %cst_216 = arith.constant dense<0.000000e+00> : vector<8x8xf32>
      %281 = tpu.matmul %280, %157, %cst_216 {dimension_numbers = #tpu.dot_dimension_numbers<[1], [1], [0], [0], [0, 0, 1, 0], [], []>} : vector<8x32xbf16>, vector<8x32xbf16>, vector<8x8xf32> -> vector<8x8xf32>
      %c3_217 = arith.constant 3 : index
      %c0_218 = arith.constant 0 : index
      %c0_219 = arith.constant 0 : index
      %282 = vector.load %arg7[%c3_217, %c0_218, %c0_219] : memref<4x8x1xf32, #tpu.memory_space<vmem>>, vector<1x8x1xf32>
      %283 = vector.shape_cast %282 : vector<1x8x1xf32> to vector<8x1xf32>
      %284 = vector.broadcast %283 : vector<8x1xf32> to vector<8x8xf32>
      %285 = arith.addf %281, %284 : vector<8x8xf32>
      %286 = arith.truncf %285 : vector<8x8xf32> to vector<8x8xbf16>
      %c3_220 = arith.constant 3 : index
      %c0_221 = arith.constant 0 : index
      %c0_222 = arith.constant 0 : index
      %287 = vector.load %arg15[%c3_220, %c0_221, %c0_222] : memref<4x8x8xbf16, #tpu.memory_space<vmem>>, vector<1x8x8xbf16>
      %288 = vector.shape_cast %287 : vector<1x8x8xbf16> to vector<8x8xbf16>
      %289 = vector.shape_cast %286 : vector<8x8xbf16> to vector<1x8x8xbf16>
      tpu.vector_store %arg15[%c3_220, %c0_221, %c0_222], %289 {strides = array<i32>} : memref<4x8x8xbf16, #tpu.memory_space<vmem>>, vector<1x8x8xbf16>,
    } else {
    }
    %c8_i32 = arith.constant 8 : i32
    %3 = arith.muli %arg1, %c8_i32 : i32
    %4 = tpu.assume_multiple %3, 8 : i32
    %c0 = arith.constant 0 : index
    %c0_1 = arith.constant 0 : index
    %c0_2 = arith.constant 0 : index
    %5 = vector.load %arg3[%c0, %c0_1, %c0_2] : memref<1x1x8xf32, #tpu.memory_space<vmem>>, vector<1x1x8xf32>
    %6 = vector.shape_cast %5 : vector<1x1x8xf32> to vector<1x8xf32>
    %cst = arith.constant -1.000000e+30 : f32
    %7 = vector.broadcast %cst : f32 to vector<1x8xf32>
    %8 = arith.mulf %6, %7 : vector<1x8xf32>
    %9 = vector.shape_cast %8 : vector<1x8xf32> to vector<1x8xf32>
    %10 = vector.broadcast %9 : vector<1x8xf32> to vector<8x8xf32>
    %cst_3 = arith.constant 5.000000e-01 : f32
    %11 = vector.broadcast %cst_3 : f32 to vector<1x8xf32>
    %12 = arith.cmpf ole, %6, %11 : vector<1x8xf32>
    %13 = vector.shape_cast %12 : vector<1x8xi1> to vector<1x8xi1>
    %14 = vector.broadcast %13 : vector<1x8xi1> to vector<8x8xi1>
    %c0_4 = arith.constant 0 : index
    %15 = arith.index_cast %4 : i32 to index
    %c0_5 = arith.constant 0 : index
    %16 = vector.load %arg14[%c0_4, %15, %c0_5] : memref<4x8x8xbf16, #tpu.memory_space<vmem>>, vector<1x8x8xbf16>
    %17 = vector.shape_cast %16 : vector<1x8x8xbf16> to vector<8x8xbf16>
    %c0_6 = arith.constant 0 : index
    %c0_7 = arith.constant 0 : index
    %c0_8 = arith.constant 0 : index
    %18 = vector.load %arg15[%c0_6, %c0_7, %c0_8] : memref<4x8x8xbf16, #tpu.memory_space<vmem>>, vector<1x8x8xbf16>
    %19 = vector.shape_cast %18 : vector<1x8x8xbf16> to vector<8x8xbf16>
    %cst_9 = arith.constant dense<0.000000e+00> : vector<8x8xf32>
    %20 = tpu.matmul %17, %19, %cst_9 {dimension_numbers = #tpu.dot_dimension_numbers<[1], [0], [0], [1], [0, 0, 1, 1], [], []>} : vector<8x8xbf16>, vector<8x8xbf16>, vector<8x8xf32> -> vector<8x8xf32>
    %21 = arith.addf %20, %10 : vector<8x8xf32>
    %cst_10 = arith.constant dense<0xFF800000> : vector<8xf32>
    %22 = vector.multi_reduction <maximumf>, %21, %cst_10 [1] : vector<8x8xf32> to vector<8xf32>
    %23 = vector.shape_cast %22 : vector<8xf32> to vector<8x1xf32>
    %24 = vector.broadcast %23 : vector<8x1xf32> to vector<8x8xf32>
    %25 = arith.subf %21, %24 : vector<8x8xf32>
    %26 = math.exp %25 : vector<8x8xf32>
    %cst_11 = arith.constant dense<0.000000e+00> : vector<8xf32>
    %27 = vector.multi_reduction <add>, %26, %cst_11 [1] : vector<8x8xf32> to vector<8xf32>
    %28 = vector.shape_cast %27 : vector<8xf32> to vector<8x1xf32>
    %cst_12 = arith.constant 1.000000e+00 : f32
    %29 = vector.broadcast %cst_12 : f32 to vector<8x1xf32>
    %30 = arith.divf %29, %28 : vector<8x1xf32>
    %31 = vector.broadcast %30 : vector<8x1xf32> to vector<8x8xf32>
    %32 = arith.mulf %26, %31 : vector<8x8xf32>
    %cst_13 = arith.constant 0.000000e+00 : f32
    %33 = vector.broadcast %cst_13 : f32 to vector<8x8xf32>
    %34 = arith.select %14, %32, %33 : vector<8x8xi1>, vector<8x8xf32>
    %c0_14 = arith.constant 0 : index
    %c0_15 = arith.constant 0 : index
    %c0_16 = arith.constant 0 : index
    %35 = vector.load %arg13[%c0_14, %c0_15, %c0_16] : memref<1x8x8xf32, #tpu.memory_space<vmem>>, vector<1x8x8xf32>
    %36 = vector.shape_cast %35 : vector<1x8x8xf32> to vector<8x8xf32>
    %37 = vector.shape_cast %34 : vector<8x8xf32> to vector<1x8x8xf32>
    tpu.vector_store %arg13[%c0_14, %c0_15, %c0_16], %37 {strides = array<i32>} : memref<1x8x8xf32, #tpu.memory_space<vmem>>, vector<1x8x8xf32>,
    %38 = arith.truncf %34 : vector<8x8xf32> to vector<8x8xbf16>
    %c0_17 = arith.constant 0 : index
    %c0_18 = arith.constant 0 : index
    %c0_19 = arith.constant 0 : index
    %39 = vector.load %arg16[%c0_17, %c0_18, %c0_19] : memref<4x8x8xbf16, #tpu.memory_space<vmem>>, vector<1x8x8xbf16>
    %40 = vector.shape_cast %39 : vector<1x8x8xbf16> to vector<8x8xbf16>
    %cst_20 = arith.constant dense<0.000000e+00> : vector<8x8xf32>
    %41 = tpu.matmul %38, %40, %cst_20 {dimension_numbers = #tpu.dot_dimension_numbers<[1], [0], [0], [1], [0, 0, 1, 1], [], []>} : vector<8x8xbf16>, vector<8x8xbf16>, vector<8x8xf32> -> vector<8x8xf32>
    %42 = arith.truncf %41 : vector<8x8xf32> to vector<8x8xbf16>
    %c0_21 = arith.constant 0 : index
    %c0_22 = arith.constant 0 : index
    %43 = vector.load %arg17[%c0_21, %c0_22] : memref<8x32xbf16, #tpu.memory_space<vmem>>, vector<8x8xbf16>
    tpu.vector_store %arg17[%c0_21, %c0_22], %42 {strides = array<i32>} : memref<8x32xbf16, #tpu.memory_space<vmem>>, vector<8x8xbf16>,
    %c1 = arith.constant 1 : index
    %44 = arith.index_cast %4 : i32 to index
    %c0_23 = arith.constant 0 : index
    %45 = vector.load %arg14[%c1, %44, %c0_23] : memref<4x8x8xbf16, #tpu.memory_space<vmem>>, vector<1x8x8xbf16>
    %46 = vector.shape_cast %45 : vector<1x8x8xbf16> to vector<8x8xbf16>
    %c1_24 = arith.constant 1 : index
    %c0_25 = arith.constant 0 : index
    %c0_26 = arith.constant 0 : index
    %47 = vector.load %arg15[%c1_24, %c0_25, %c0_26] : memref<4x8x8xbf16, #tpu.memory_space<vmem>>, vector<1x8x8xbf16>
    %48 = vector.shape_cast %47 : vector<1x8x8xbf16> to vector<8x8xbf16>
    %cst_27 = arith.constant dense<0.000000e+00> : vector<8x8xf32>
    %49 = tpu.matmul %46, %48, %cst_27 {dimension_numbers = #tpu.dot_dimension_numbers<[1], [0], [0], [1], [0, 0, 1, 1], [], []>} : vector<8x8xbf16>, vector<8x8xbf16>, vector<8x8xf32> -> vector<8x8xf32>
    %50 = arith.addf %49, %10 : vector<8x8xf32>
    %cst_28 = arith.constant dense<0xFF800000> : vector<8xf32>
    %51 = vector.multi_reduction <maximumf>, %50, %cst_28 [1] : vector<8x8xf32> to vector<8xf32>
    %52 = vector.shape_cast %51 : vector<8xf32> to vector<8x1xf32>
    %53 = vector.broadcast %52 : vector<8x1xf32> to vector<8x8xf32>
    %54 = arith.subf %50, %53 : vector<8x8xf32>
    %55 = math.exp %54 : vector<8x8xf32>
    %cst_29 = arith.constant dense<0.000000e+00> : vector<8xf32>
    %56 = vector.multi_reduction <add>, %55, %cst_29 [1] : vector<8x8xf32> to vector<8xf32>
    %57 = vector.shape_cast %56 : vector<8xf32> to vector<8x1xf32>
    %cst_30 = arith.constant 1.000000e+00 : f32
    %58 = vector.broadcast %cst_30 : f32 to vector<8x1xf32>
    %59 = arith.divf %58, %57 : vector<8x1xf32>
    %60 = vector.broadcast %59 : vector<8x1xf32> to vector<8x8xf32>
    %61 = arith.mulf %55, %60 : vector<8x8xf32>
    %cst_31 = arith.constant 0.000000e+00 : f32
    %62 = vector.broadcast %cst_31 : f32 to vector<8x8xf32>
    %63 = arith.select %14, %61, %62 : vector<8x8xi1>, vector<8x8xf32>
    %c0_32 = arith.constant 0 : index
    %c0_33 = arith.constant 0 : index
    %c0_34 = arith.constant 0 : index
    %64 = vector.load %arg13[%c0_32, %c0_33, %c0_34] : memref<1x8x8xf32, #tpu.memory_space<vmem>>, vector<1x8x8xf32>
    %65 = vector.shape_cast %64 : vector<1x8x8xf32> to vector<8x8xf32>
    %66 = arith.addf %65, %63 : vector<8x8xf32>
    %c0_35 = arith.constant 0 : index
    %c0_36 = arith.constant 0 : index
    %c0_37 = arith.constant 0 : index
    %67 = vector.load %arg13[%c0_35, %c0_36, %c0_37] : memref<1x8x8xf32, #tpu.memory_space<vmem>>, vector<1x8x8xf32>
    %68 = vector.shape_cast %67 : vector<1x8x8xf32> to vector<8x8xf32>
    %69 = vector.shape_cast %66 : vector<8x8xf32> to vector<1x8x8xf32>
    tpu.vector_store %arg13[%c0_35, %c0_36, %c0_37], %69 {strides = array<i32>} : memref<1x8x8xf32, #tpu.memory_space<vmem>>, vector<1x8x8xf32>,
    %70 = arith.truncf %63 : vector<8x8xf32> to vector<8x8xbf16>
    %c1_38 = arith.constant 1 : index
    %c0_39 = arith.constant 0 : index
    %c0_40 = arith.constant 0 : index
    %71 = vector.load %arg16[%c1_38, %c0_39, %c0_40] : memref<4x8x8xbf16, #tpu.memory_space<vmem>>, vector<1x8x8xbf16>
    %72 = vector.shape_cast %71 : vector<1x8x8xbf16> to vector<8x8xbf16>
    %cst_41 = arith.constant dense<0.000000e+00> : vector<8x8xf32>
    %73 = tpu.matmul %70, %72, %cst_41 {dimension_numbers = #tpu.dot_dimension_numbers<[1], [0], [0], [1], [0, 0, 1, 1], [], []>} : vector<8x8xbf16>, vector<8x8xbf16>, vector<8x8xf32> -> vector<8x8xf32>
    %74 = arith.truncf %73 : vector<8x8xf32> to vector<8x8xbf16>
    %c0_42 = arith.constant 0 : index
    %c8 = arith.constant 8 : index
    %75 = vector.load %arg17[%c0_42, %c8] : memref<8x32xbf16, #tpu.memory_space<vmem>>, vector<8x8xbf16>
    tpu.vector_store %arg17[%c0_42, %c8], %74 {strides = array<i32>} : memref<8x32xbf16, #tpu.memory_space<vmem>>, vector<8x8xbf16>,
    %c2 = arith.constant 2 : index
    %76 = arith.index_cast %4 : i32 to index
    %c0_43 = arith.constant 0 : index
    %77 = vector.load %arg14[%c2, %76, %c0_43] : memref<4x8x8xbf16, #tpu.memory_space<vmem>>, vector<1x8x8xbf16>
    %78 = vector.shape_cast %77 : vector<1x8x8xbf16> to vector<8x8xbf16>
    %c2_44 = arith.constant 2 : index
    %c0_45 = arith.constant 0 : index
    %c0_46 = arith.constant 0 : index
    %79 = vector.load %arg15[%c2_44, %c0_45, %c0_46] : memref<4x8x8xbf16, #tpu.memory_space<vmem>>, vector<1x8x8xbf16>
    %80 = vector.shape_cast %79 : vector<1x8x8xbf16> to vector<8x8xbf16>
    %cst_47 = arith.constant dense<0.000000e+00> : vector<8x8xf32>
    %81 = tpu.matmul %78, %80, %cst_47 {dimension_numbers = #tpu.dot_dimension_numbers<[1], [0], [0], [1], [0, 0, 1, 1], [], []>} : vector<8x8xbf16>, vector<8x8xbf16>, vector<8x8xf32> -> vector<8x8xf32>
    %82 = arith.addf %81, %10 : vector<8x8xf32>
    %cst_48 = arith.constant dense<0xFF800000> : vector<8xf32>
    %83 = vector.multi_reduction <maximumf>, %82, %cst_48 [1] : vector<8x8xf32> to vector<8xf32>
    %84 = vector.shape_cast %83 : vector<8xf32> to vector<8x1xf32>
    %85 = vector.broadcast %84 : vector<8x1xf32> to vector<8x8xf32>
    %86 = arith.subf %82, %85 : vector<8x8xf32>
    %87 = math.exp %86 : vector<8x8xf32>
    %cst_49 = arith.constant dense<0.000000e+00> : vector<8xf32>
    %88 = vector.multi_reduction <add>, %87, %cst_49 [1] : vector<8x8xf32> to vector<8xf32>
    %89 = vector.shape_cast %88 : vector<8xf32> to vector<8x1xf32>
    %cst_50 = arith.constant 1.000000e+00 : f32
    %90 = vector.broadcast %cst_50 : f32 to vector<8x1xf32>
    %91 = arith.divf %90, %89 : vector<8x1xf32>
    %92 = vector.broadcast %91 : vector<8x1xf32> to vector<8x8xf32>
    %93 = arith.mulf %87, %92 : vector<8x8xf32>
    %cst_51 = arith.constant 0.000000e+00 : f32
    %94 = vector.broadcast %cst_51 : f32 to vector<8x8xf32>
    %95 = arith.select %14, %93, %94 : vector<8x8xi1>, vector<8x8xf32>
    %c0_52 = arith.constant 0 : index
    %c0_53 = arith.constant 0 : index
    %c0_54 = arith.constant 0 : index
    %96 = vector.load %arg13[%c0_52, %c0_53, %c0_54] : memref<1x8x8xf32, #tpu.memory_space<vmem>>, vector<1x8x8xf32>
    %97 = vector.shape_cast %96 : vector<1x8x8xf32> to vector<8x8xf32>
    %98 = arith.addf %97, %95 : vector<8x8xf32>
    %c0_55 = arith.constant 0 : index
    %c0_56 = arith.constant 0 : index
    %c0_57 = arith.constant 0 : index
    %99 = vector.load %arg13[%c0_55, %c0_56, %c0_57] : memref<1x8x8xf32, #tpu.memory_space<vmem>>, vector<1x8x8xf32>
    %100 = vector.shape_cast %99 : vector<1x8x8xf32> to vector<8x8xf32>
    %101 = vector.shape_cast %98 : vector<8x8xf32> to vector<1x8x8xf32>
    tpu.vector_store %arg13[%c0_55, %c0_56, %c0_57], %101 {strides = array<i32>} : memref<1x8x8xf32, #tpu.memory_space<vmem>>, vector<1x8x8xf32>,
    %102 = arith.truncf %95 : vector<8x8xf32> to vector<8x8xbf16>
    %c2_58 = arith.constant 2 : index
    %c0_59 = arith.constant 0 : index
    %c0_60 = arith.constant 0 : index
    %103 = vector.load %arg16[%c2_58, %c0_59, %c0_60] : memref<4x8x8xbf16, #tpu.memory_space<vmem>>, vector<1x8x8xbf16>
    %104 = vector.shape_cast %103 : vector<1x8x8xbf16> to vector<8x8xbf16>
    %cst_61 = arith.constant dense<0.000000e+00> : vector<8x8xf32>
    %105 = tpu.matmul %102, %104, %cst_61 {dimension_numbers = #tpu.dot_dimension_numbers<[1], [0], [0], [1], [0, 0, 1, 1], [], []>} : vector<8x8xbf16>, vector<8x8xbf16>, vector<8x8xf32> -> vector<8x8xf32>
    %106 = arith.truncf %105 : vector<8x8xf32> to vector<8x8xbf16>
    %c0_62 = arith.constant 0 : index
    %c16 = arith.constant 16 : index
    %107 = vector.load %arg17[%c0_62, %c16] : memref<8x32xbf16, #tpu.memory_space<vmem>>, vector<8x8xbf16>
    tpu.vector_store %arg17[%c0_62, %c16], %106 {strides = array<i32>} : memref<8x32xbf16, #tpu.memory_space<vmem>>, vector<8x8xbf16>,
    %c3 = arith.constant 3 : index
    %108 = arith.index_cast %4 : i32 to index
    %c0_63 = arith.constant 0 : index
    %109 = vector.load %arg14[%c3, %108, %c0_63] : memref<4x8x8xbf16, #tpu.memory_space<vmem>>, vector<1x8x8xbf16>
    %110 = vector.shape_cast %109 : vector<1x8x8xbf16> to vector<8x8xbf16>
    %c3_64 = arith.constant 3 : index
    %c0_65 = arith.constant 0 : index
    %c0_66 = arith.constant 0 : index
    %111 = vector.load %arg15[%c3_64, %c0_65, %c0_66] : memref<4x8x8xbf16, #tpu.memory_space<vmem>>, vector<1x8x8xbf16>
    %112 = vector.shape_cast %111 : vector<1x8x8xbf16> to vector<8x8xbf16>
    %cst_67 = arith.constant dense<0.000000e+00> : vector<8x8xf32>
    %113 = tpu.matmul %110, %112, %cst_67 {dimension_numbers = #tpu.dot_dimension_numbers<[1], [0], [0], [1], [0, 0, 1, 1], [], []>} : vector<8x8xbf16>, vector<8x8xbf16>, vector<8x8xf32> -> vector<8x8xf32>
    %114 = arith.addf %113, %10 : vector<8x8xf32>
    %cst_68 = arith.constant dense<0xFF800000> : vector<8xf32>
    %115 = vector.multi_reduction <maximumf>, %114, %cst_68 [1] : vector<8x8xf32> to vector<8xf32>
    %116 = vector.shape_cast %115 : vector<8xf32> to vector<8x1xf32>
    %117 = vector.broadcast %116 : vector<8x1xf32> to vector<8x8xf32>
    %118 = arith.subf %114, %117 : vector<8x8xf32>
    %119 = math.exp %118 : vector<8x8xf32>
    %cst_69 = arith.constant dense<0.000000e+00> : vector<8xf32>
    %120 = vector.multi_reduction <add>, %119, %cst_69 [1] : vector<8x8xf32> to vector<8xf32>
    %121 = vector.shape_cast %120 : vector<8xf32> to vector<8x1xf32>
    %cst_70 = arith.constant 1.000000e+00 : f32
    %122 = vector.broadcast %cst_70 : f32 to vector<8x1xf32>
    %123 = arith.divf %122, %121 : vector<8x1xf32>
    %124 = vector.broadcast %123 : vector<8x1xf32> to vector<8x8xf32>
    %125 = arith.mulf %119, %124 : vector<8x8xf32>
    %cst_71 = arith.constant 0.000000e+00 : f32
    %126 = vector.broadcast %cst_71 : f32 to vector<8x8xf32>
    %127 = arith.select %14, %125, %126 : vector<8x8xi1>, vector<8x8xf32>
    %c0_72 = arith.constant 0 : index
    %c0_73 = arith.constant 0 : index
    %c0_74 = arith.constant 0 : index
    %128 = vector.load %arg13[%c0_72, %c0_73, %c0_74] : memref<1x8x8xf32, #tpu.memory_space<vmem>>, vector<1x8x8xf32>
    %129 = vector.shape_cast %128 : vector<1x8x8xf32> to vector<8x8xf32>
    %130 = arith.addf %129, %127 : vector<8x8xf32>
    %c0_75 = arith.constant 0 : index
    %c0_76 = arith.constant 0 : index
    %c0_77 = arith.constant 0 : index
    %131 = vector.load %arg13[%c0_75, %c0_76, %c0_77] : memref<1x8x8xf32, #tpu.memory_space<vmem>>, vector<1x8x8xf32>
    %132 = vector.shape_cast %131 : vector<1x8x8xf32> to vector<8x8xf32>
    %133 = vector.shape_cast %130 : vector<8x8xf32> to vector<1x8x8xf32>
    tpu.vector_store %arg13[%c0_75, %c0_76, %c0_77], %133 {strides = array<i32>} : memref<1x8x8xf32, #tpu.memory_space<vmem>>, vector<1x8x8xf32>,
    %134 = arith.truncf %127 : vector<8x8xf32> to vector<8x8xbf16>
    %c3_78 = arith.constant 3 : index
    %c0_79 = arith.constant 0 : index
    %c0_80 = arith.constant 0 : index
    %135 = vector.load %arg16[%c3_78, %c0_79, %c0_80] : memref<4x8x8xbf16, #tpu.memory_space<vmem>>, vector<1x8x8xbf16>
    %136 = vector.shape_cast %135 : vector<1x8x8xbf16> to vector<8x8xbf16>
    %cst_81 = arith.constant dense<0.000000e+00> : vector<8x8xf32>
    %137 = tpu.matmul %134, %136, %cst_81 {dimension_numbers = #tpu.dot_dimension_numbers<[1], [0], [0], [1], [0, 0, 1, 1], [], []>} : vector<8x8xbf16>, vector<8x8xbf16>, vector<8x8xf32> -> vector<8x8xf32>
    %138 = arith.truncf %137 : vector<8x8xf32> to vector<8x8xbf16>
    %c0_82 = arith.constant 0 : index
    %c24 = arith.constant 24 : index
    %139 = vector.load %arg17[%c0_82, %c24] : memref<8x32xbf16, #tpu.memory_space<vmem>>, vector<8x8xbf16>
    tpu.vector_store %arg17[%c0_82, %c24], %138 {strides = array<i32>} : memref<8x32xbf16, #tpu.memory_space<vmem>>, vector<8x8xbf16>,
    %c0_83 = arith.constant 0 : index
    %c0_84 = arith.constant 0 : index
    %c0_85 = arith.constant 0 : index
    %140 = vector.load %arg13[%c0_83, %c0_84, %c0_85] : memref<1x8x8xf32, #tpu.memory_space<vmem>>, vector<1x8x8xf32>
    %141 = vector.shape_cast %140 : vector<1x8x8xf32> to vector<8x8xf32>
    %cst_86 = arith.constant 2.500000e-01 : f32
    %142 = vector.broadcast %cst_86 : f32 to vector<8x8xf32>
    %143 = arith.mulf %141, %142 : vector<8x8xf32>
    %c0_87 = arith.constant 0 : index
    %c0_88 = arith.constant 0 : index
    %c0_89 = arith.constant 0 : index
    %144 = vector.load %arg13[%c0_87, %c0_88, %c0_89] : memref<1x8x8xf32, #tpu.memory_space<vmem>>, vector<1x8x8xf32>
    %145 = vector.shape_cast %144 : vector<1x8x8xf32> to vector<8x8xf32>
    %146 = vector.shape_cast %143 : vector<8x8xf32> to vector<1x8x8xf32>
    tpu.vector_store %arg13[%c0_87, %c0_88, %c0_89], %146 {strides = array<i32>} : memref<1x8x8xf32, #tpu.memory_space<vmem>>, vector<1x8x8xf32>,
    %c0_90 = arith.constant 0 : index
    %c0_91 = arith.constant 0 : index
    %147 = vector.load %arg17[%c0_90, %c0_91] : memref<8x32xbf16, #tpu.memory_space<vmem>>, vector<8x32xbf16>
    %c0_92 = arith.constant 0 : index
    %c0_93 = arith.constant 0 : index
    %148 = vector.load %arg10[%c0_92, %c0_93] : memref<32x32xbf16, #tpu.memory_space<vmem>>, vector<32x32xbf16>
    %cst_94 = arith.constant dense<0.000000e+00> : vector<8x32xf32>
    %149 = tpu.matmul %147, %148, %cst_94 {dimension_numbers = #tpu.dot_dimension_numbers<[1], [0], [0], [1], [0, 0, 1, 1], [], []>} : vector<8x32xbf16>, vector<32x32xbf16>, vector<8x32xf32> -> vector<8x32xf32>
    %c0_95 = arith.constant 0 : index
    %c0_96 = arith.constant 0 : index
    %150 = vector.load %arg11[%c0_95, %c0_96] : memref<1x32xf32, #tpu.memory_space<vmem>>, vector<1x32xf32>
    %151 = vector.broadcast %150 : vector<1x32xf32> to vector<8x32xf32>
    %152 = arith.addf %149, %151 : vector<8x32xf32>
    %c0_97 = arith.constant 0 : index
    %c0_98 = arith.constant 0 : index
    %c0_99 = arith.constant 0 : index
    %153 = vector.load %arg12[%c0_97, %c0_98, %c0_99] : memref<1x8x32xf32, #tpu.memory_space<vmem>>, vector<1x8x32xf32>
    %154 = vector.shape_cast %153 : vector<1x8x32xf32> to vector<8x32xf32>
    %155 = vector.shape_cast %152 : vector<8x32xf32> to vector<1x8x32xf32>
    tpu.vector_store %arg12[%c0_97, %c0_98, %c0_99], %155 {strides = array<i32>} : memref<1x8x32xf32, #tpu.memory_space<vmem>>, vector<1x8x32xf32>,
    return
  }
  func.func @transform_0(%arg0: i32, %arg1: i32) -> (i32, i32, i32) {
    %c0_i32 = arith.constant 0 : i32
    %c0_i32_0 = arith.constant 0 : i32
    %c0_i32_1 = arith.constant 0 : i32
    return %arg0, %c0_i32, %c0_i32_0 : i32, i32, i32
  }
  func.func @transform_1(%arg0: i32, %arg1: i32) -> (i32, i32, i32) {
    %c0_i32 = arith.constant 0 : i32
    %c0_i32_0 = arith.constant 0 : i32
    %c0_i32_1 = arith.constant 0 : i32
    return %arg0, %c0_i32, %c0_i32_0 : i32, i32, i32
  }
  func.func @transform_2(%arg0: i32, %arg1: i32) -> (i32, i32, i32) {
    %c0_i32 = arith.constant 0 : i32
    %c0_i32_0 = arith.constant 0 : i32
    %c0_i32_1 = arith.constant 0 : i32
    %c0_i32_2 = arith.constant 0 : i32
    return %c0_i32, %c0_i32_0, %c0_i32_1 : i32, i32, i32
  }
  func.func @transform_3(%arg0: i32, %arg1: i32) -> (i32, i32, i32) {
    %c0_i32 = arith.constant 0 : i32
    %c0_i32_0 = arith.constant 0 : i32
    %c0_i32_1 = arith.constant 0 : i32
    %c0_i32_2 = arith.constant 0 : i32
    return %c0_i32, %c0_i32_0, %c0_i32_1 : i32, i32, i32
  }
  func.func @transform_4(%arg0: i32, %arg1: i32) -> (i32, i32, i32) {
    %c0_i32 = arith.constant 0 : i32
    %c0_i32_0 = arith.constant 0 : i32
    %c0_i32_1 = arith.constant 0 : i32
    %c0_i32_2 = arith.constant 0 : i32
    return %c0_i32, %c0_i32_0, %c0_i32_1 : i32, i32, i32
  }
  func.func @transform_5(%arg0: i32, %arg1: i32) -> (i32, i32, i32) {
    %c0_i32 = arith.constant 0 : i32
    %c0_i32_0 = arith.constant 0 : i32
    %c0_i32_1 = arith.constant 0 : i32
    %c0_i32_2 = arith.constant 0 : i32
    return %c0_i32, %c0_i32_0, %c0_i32_1 : i32, i32, i32
  }
  func.func @transform_6(%arg0: i32, %arg1: i32) -> (i32, i32, i32) {
    %c0_i32 = arith.constant 0 : i32
    %c0_i32_0 = arith.constant 0 : i32
    %c0_i32_1 = arith.constant 0 : i32
    %c0_i32_2 = arith.constant 0 : i32
    return %c0_i32, %c0_i32_0, %c0_i32_1 : i32, i32, i32
  }
  func.func @transform_7(%arg0: i32, %arg1: i32) -> (i32, i32, i32) {
    %c0_i32 = arith.constant 0 : i32
    %c0_i32_0 = arith.constant 0 : i32
    %c0_i32_1 = arith.constant 0 : i32
    %c0_i32_2 = arith.constant 0 : i32
    return %c0_i32, %c0_i32_0, %c0_i32_1 : i32, i32, i32
  }
  func.func @transform_8(%arg0: i32, %arg1: i32) -> (i32, i32) {
    %c0_i32 = arith.constant 0 : i32
    %c0_i32_0 = arith.constant 0 : i32
    %c0_i32_1 = arith.constant 0 : i32
    return %c0_i32, %c0_i32_0 : i32, i32
  }
  func.func @transform_9(%arg0: i32, %arg1: i32) -> (i32, i32) {
    %c0_i32 = arith.constant 0 : i32
    %c0_i32_0 = arith.constant 0 : i32
    %c0_i32_1 = arith.constant 0 : i32
    return %c0_i32, %c0_i32_0 : i32, i32
  }
  func.func @transform_10(%arg0: i32, %arg1: i32) -> (i32, i32, i32) {
    %c0_i32 = arith.constant 0 : i32
    %c0_i32_0 = arith.constant 0 : i32
    return %arg0, %arg1, %c0_i32 : i32, i32, i32
  }
  func.func @transform_11(%arg0: i32, %arg1: i32) -> (i32, i32, i32) {
    %c0_i32 = arith.constant 0 : i32
    %c0_i32_0 = arith.constant 0 : i32
    return %arg0, %arg1, %c0_i32 : i32, i32, i32
  }
}

</mosaic_0001>

<bundles_post_ra>
// kernel: tpu_custom_call.1
= control target key start
LH: loop header
LB: loop body
LE: loop exit
PB: predicated region body
PF: predicated region fallthrough
CT: control target
= control target key end

     0   :  { %s2940_s0 = inlined_call_operand.vmem [shape: bf16[2,8,32], index: 0, kind: input, shape index: {}]   ;;  %s2941_s1 = inlined_call_operand.vmem [shape: f32[2,1,8], index: 1, kind: input, shape index: {}]   ;;  %s2942_s2 = inlined_call_operand.vmem [shape: bf16[4,32,8], index: 2, kind: input, shape index: {}]   ;;  %s2943_s3 = inlined_call_operand.vmem [shape: f32[4,1,8], index: 3, kind: input, shape index: {}]   ;;  %s2944_s4 = inlined_call_operand.vmem [shape: bf16[4,8,32], index: 4, kind: input, shape index: {}]   ;;  %s2945_s5 = inlined_call_operand.vmem [shape: f32[4,8,1], index: 5, kind: input, shape index: {}]   ;;  %s2946_s6 = inlined_call_operand.vmem [shape: bf16[4,32,8], index: 6, kind: input, shape index: {}]   ;;  %s2947_s7 = inlined_call_operand.vmem [shape: f32[4,1,8], index: 7, kind: input, shape index: {}]   ;;  %s2948_s8 = inlined_call_operand.vmem [shape: bf16[32,32], index: 8, kind: input, shape index: {}]   ;;  %s2949_s9 = inlined_call_operand.vmem [shape: f32[1,32], index: 9, kind: input, shape index: {}]   ;;  %s2950_s10 = inlined_call_operand.hbm [shape: f32[2,8,32], index: 10, kind: output, shape index: {0}]   ;;  %s2951_s11 = inlined_call_operand.hbm [shape: f32[2,8,8], index: 11, kind: output, shape index: {1}]  }
   0x1   :  { %2954 = sst [smem:[#allocation12_spill]] %s2940_s0 }
   0x2   :  { %2955 = sst [smem:[#allocation13_spill]] %s2941_s1 }
   0x3   :  { %2956 = sst [smem:[#allocation14_spill]] %s2942_s2 }
   0x4   :  { %2957 = sst [smem:[#allocation15_spill]] %s2943_s3 }
   0x5   :  { %17 = vsyncpa [#allocation7], 0 }
   0x6   :  { %19 = vsyncpa [#allocation7 + $0x1], 0 }
   0x7   :  { %20 = vsyncpa [#allocation9], 0 }
   0x8   :  { %22 = vsyncpa [#allocation9 + $0x1], 0  ;;  %s2513_s17 = smov 0   ;;  %s2515_s18 = smov 0  }
   0x9   :  { %s2517_s19 = smov 0   ;;  %s2519_s20 = smov 0  }
   0xa   :  { %s2521_s21 = smov 0   ;;  %s2523_s22 = smov 0  }
   0xb LB: > { %s1929_s23 = sadd.s32 4294967295, %s2443_s22   ;;  %s1930_s24 = sadd.s32 4294967294, %s2443_s22   ;;  %s2443_s22 = sphi %s2523_s22, %s28_s22   ;;  %s2439_s21 = sphi %s2521_s21, %s2970_s21   ;;  %s2435_s20 = sphi %s2519_s20, %s2969_s20   ;;  %s2431_s19 = sphi %s2517_s19, %s2968_s19   ;;  %s2427_s18 = sphi %s2515_s18, %s2967_s18   ;;  %s2423_s17 = sphi %s2513_s17, %s2966_s17  }
   0xc   : > { %s40_s25 = sadd.s32 1, %s2439_s21  ;;  %s269_s26 = sadd.s32 1, %s2431_s19 }
   0xd   : > { %p42_p0 = scmp.ge.s32.totalorder %s40_s25, 2  ;;  %p279_p1 = scmp.ne.s32.totalorder %s2431_s19, %s2427_s18 }
   0xe   : > { %p280_p2 = scmp.eq.s32.totalorder %s1929_s23, 1  ;;  %p285_p3 = scmp.ne.s32.totalorder %s2427_s18, %s2423_s17 }
   0xf   : > { %s2972_s25 = smov (%p42_p0, %s40_s25), 0  ;;  %p286_p5 = scmp.eq.s32.totalorder %s1930_s24, 1 }
  0x10   : > { %p2553_p4 = por %p280_p2, %p279_p1  ;;  %s264_s28 = ssub.s32 %s2439_s21, %s2972_s25 }
  0x11   : > { %p1933_p6 = scmp.ge.s32.totalorder %s2443_s22, 1  ;;  %p267_p7 = scmp.eq.s32.totalorder %s264_s28, 0 }
  0x12   : > { %p2560_p8 = por %p286_p5, %p285_p3  ;;  %p369_p9 = scmp.lt.s32.totalorder %s2443_s22, 3 }
  0x13   : > { %s2566_s30 = scalar_select %p267_p7, %s2431_s19, %s269_s26  }
  0x14   : > { %p370_p10 = pnand %p1933_p6, %p369_p9 }
  0x15   : > { %s2960_s2 = sld [smem:[#allocation14_spill]] (!%p370_p10)  ;;  %v2445_v1 = vmov (!%p370_p10), 0.0   ;;  %v2300_v2 = vld [vmem:[%s2946_s6] sm:$0xff] (!%p370_p10)   ;;  %vm2446_vm0 = vmmov (!%p370_p10), 0   ;;  %p416_p11 = scmp.lt.s32.totalorder (!%p370_p10), %s2435_s20, 1  ;;  %v2302_v4 = vld [vmem:[%s2946_s6 + $0x8] sm:$0xff] (!%p370_p10)  }
  0x16   : > { %373 = sbr.rel (%p370_p10) target bundleno = 1409 (0x581), region = 60  ;;  %2087 = vmatprep.subr.bf16.mxu0 (!%p370_p10), %v2445_v1  ;;  %2095 = vmatprep.subr.bf16.mxu1 (!%p370_p10), %v2445_v1  ;;  %vm452_vm1 = vcmask (!%p370_p10), 261120   ;;  %v2447_v6 = vmov (!%p370_p10), 0   ;;  %s2961_s0 = sld [smem:[#allocation12_spill]] (!%p370_p10)  ;;  %v565_v11 = vld [vmem:[%s2945_s5] sm:$0xff] (!%p370_p10)  ;;  %v1986_v12 = vld [vmem:[%s2945_s5 + $0x10] sm:$0xff] (!%p370_p10) }
  0x17   : > { %2099 = vmatprep.mubr.msk.bf16.mxu1 (!%p370_p10), %vm2446_vm0, %v2445_v1  ;;  %2096 = vmatpush3.bf16.msra.mxu1 (!%p370_p10), %v2300_v2  ;;  %s2962_s1 = sld [smem:[#allocation13_spill]] (!%p370_p10)  ;;  %v564_v13 = vld [vmem:[%s2944_s4] sm:$0xf] (!%p370_p10)  ;;  %v2305_v14 = vld [vmem:[%s2946_s6 + $0x10] sm:$0xff] (!%p370_p10)   ;;  %v1965_v16 = vld [vmem:[%s2945_s5 + $0x8] sm:$0xff] (!%p370_p10)  ;;  %s2963_s3 = sld [smem:[#allocation15_spill]] (!%p370_p10) }
  0x18   : > { %2097 = vmatprep.subr.bf16.mxu1 (!%p370_p10), %v2445_v1  ;;  %2091 = vmatprep.mubr.msk.bf16.mxu0 (!%p370_p10), %vm2446_vm0, %v2445_v1  ;;  %v2007_v17 = vld [vmem:[%s2945_s5 + $0x18] sm:$0xff] (!%p370_p10)  ;;  %v1964_v20 = vld [vmem:[%s2944_s4 + $0x4] sm:$0xf] (!%p370_p10)  ;;  %v2310_v23 = vld [vmem:[%s2946_s6 + $0x28] sm:$0xff] (!%p370_p10)   ;;  %vm497_vm3 = vcmask (!%p370_p10), 60416   ;;  %vm1215_vm4 = vcmask (!%p370_p10), 1043456  }
  0x19   : > { %2297 = vset.pattern.permute.xlu0 (!%p370_p10), %v2447_v6  ;;  %2298 = vset.pattern.permute.xlu1 (!%p370_p10), %v2447_v6  ;;  %v2306_v18 = vld [vmem:[%s2946_s6 + $0x18] sm:$0xff] (!%p370_p10)   ;;  %v2308_v21 = vld [vmem:[%s2946_s6 + $0x20] sm:$0xff] (!%p370_p10)   ;;  %v1985_v26 = vld [vmem:[%s2944_s4 + $0x8] sm:$0xf] (!%p370_p10)  ;;  %vm1211_vm5 = vcmask (!%p370_p10), 64512   ;;  %s2449_s15 = smov (!%p370_p10), 16  }
  0x1a   : > { %568 = vperm.xlu0 (!%p370_p10), %2297, %v565_v11   ;;  %949 = vperm.xlu1 (!%p370_p10), %2298, %v1986_v12   ;;  %v2006_v27 = vld [vmem:[%s2944_s4 + $0xc] sm:$0xf] (!%p370_p10)  ;;  %v2313_v28 = vld [vmem:[%s2946_s6 + $0x30] sm:$0xff] (!%p370_p10)   ;;  %v2314_v29 = vld [vmem:[%s2946_s6 + $0x38] sm:$0xff] (!%p370_p10)   ;;  %s2450_s16 = smov (!%p370_p10), 24   ;;  %vm1448_vm7 = vcmask (!%p370_p10), 126016  }
  0x1b   : > { %v2299_v0 = vld [vmem:[%s2960_s2] sm:$0xff] (!%p370_p10)   ;;  %v2301_v3 = vld [vmem:[%s2960_s2 + $0x8] sm:$0xff] (!%p370_p10)   ;;  %v2303_v5 = vld [vmem:[%s2960_s2 + $0x10] sm:$0xff] (!%p370_p10)   ;;  %2098 = vmatpush3.bf16.msra.mxu1 (!%p370_p10), %v2302_v4  ;;  %vm1574_vm8 = vcmask (!%p370_p10), 191616   ;;  %vm1700_vm9 = vcmask (!%p370_p10), 257216  }
  0x1c   : > { %2088 = vmatpush3.bf16.msra.mxu0 (!%p370_p10), %v2299_v0  ;;  %2109 = vmatprep.subr.bf16.mxu1 (!%p370_p10), %v2445_v1  ;;  %v2304_v8 = vld [vmem:[%s2960_s2 + $0x18] sm:$0xff] (!%p370_p10)   ;;  %v2307_v19 = vld [vmem:[%s2960_s2 + $0x20] sm:$0xff] (!%p370_p10)   ;;  %v2309_v22 = vld [vmem:[%s2960_s2 + $0x28] sm:$0xff] (!%p370_p10)  }
  0x1d   : > { %2089 = vmatprep.subr.bf16.mxu0 %v2445_v1  ;;  %s417_s28 = scalar_select %p416_p11, %s2435_s20, 1  ;;  %v2311_v24 = vld [vmem:[%s2960_s2 + $0x30] sm:$0xff]   ;;  %v2312_v25 = vld [vmem:[%s2960_s2 + $0x38] sm:$0xff]   ;;  %v1937_v30 = vld [vmem:[%s2963_s3] ss:$0 sm:$0xff] }
  0x1e   : > { %758 = vperm.xlu0 %2297, %v1965_v16   ;;  %1140 = vperm.xlu1 %2298, %v2007_v17   ;;  %v1941_v31 = vld [vmem:[%s2947_s7] ss:$0 sm:$0xff]  ;;  %v1951_v44 = vld [vmem:[%s2963_s3 + $0x1] ss:$0 sm:$0xff]  ;;  %v1981_v16 = vld [vmem:[%s2947_s7 + $0x2] ss:$0 sm:$0xff] }
  0x1f   : > { %s1936_s12 = sshll.u32 %s417_s28, 2  ;;  %s422_s14 = scalar_lea.vmem %s2962_s1, %s417_s28  ;;  %v1960_v60 = vld [vmem:[%s2947_s7 + $0x1] ss:$0 sm:$0xff] }
  0x20   : > { %2090 = vmatpush3.bf16.msra.mxu0 %v2301_v3  ;;  %s419_s23 = scalar_lea.vmem %s2961_s0, %s1936_s12  ;;  %v2620_v10 = vld [vmem:[%s422_s14] sm:$0x1]  ;;  %s2448_s28 = smov 8  }
  0x21   : > { %2103 = vmatprep.subr.bf16.mxu0 %v2445_v1  ;;  %v2597_v7 = vld [vmem:[%s419_s23] sm:$0xf]  ;;  %vm1198_vm2 = vcmp.le.f32.partialorder %v2620_v10, 0.5  ;;  %s2804_s23 = sand.u32 1, %s2427_s18  }
  0x22   : > { %2100 = vmatmul.mubr.msk.bf16.vlgmr.msra.gmra.mrb[0].mxu1 %vm452_vm1, %v2597_v7  ;;  %v2614_v9 = vsel %vm452_vm1, %v2597_v7, 0  ;;  %v2637_v15 = vsel %vm1198_vm2, 1, %v2447_v6  ;;  %s2952_s24 = sshll.u32 %s2804_s23, 3 }
  0x23   : > { %2092 = vmatmul.mubr.msk.bf16.vlgmr.msra.gmra.mrb[0].mxu0 %vm452_vm1, %v2597_v7  ;;  %2110 = vmatpush3.bf16.msra.mxu1 %v2303_v5  ;;  %s2811_s0 = scalar_lea.vmem [#allocation8], %s2952_s24  ;;  %s2451_s24 = smov [#allocation8]  }
  0x24   : > { %2105 = vmatprep.mubr.msk.bf16.mxu0 %vm2446_vm0, %v2445_v1  ;;  %2113 = vmatprep.mubr.msk.bf16.mxu1 %vm2446_vm0, %v2445_v1  ;;  %s1808_s14 = sshll.u32 %s2811_s0, 4  ;;  %s2337_s1 = sshll.u32 %s2451_s24, 4  ;;  %s1809_s14 = int_to_ptr.vmem [resolvable:$true] %s1808_s14  ;;  %s2338_s1 = int_to_ptr.vmem [resolvable:$false] %s2337_s1 }
  0x25   : > { %2111 = vmatprep.subr.bf16.mxu1 %v2445_v1  ;;  %s2339_s2 = scalar_lea.vmem %s2338_s1, 256  ;;  %p2340_p1 = scmp.lt.s32.totalorder %s1809_s14, %s2338_s1 }
  0x27   : > { %2112 = vmatpush3.bf16.msra.mxu1 %v2304_v8 }
  0x28   : > { %2125 = vmatprep.subr.bf16.mxu1 %v2445_v1 }
  0x29   : > { %2104 = vmatpush3.bf16.xpose.msra.mxu0 %v2614_v9 }
  0x2a   : > { %2117 = vmatprep.subr.bf16.mxu0 %v2445_v1  ;;  %2114 = vmatmul.mubr.msk.bf16.vlgmr.msra.gmra.mrb[4].mxu1 %vm452_vm1, %v2597_v7 }
  0x2b   : > { %2127 = vmatprep.mubr.msk.bf16.mxu1 %vm2446_vm0, %v2445_v1 }
  0x30   : > { %2106 = vmatmul.mubr.msk.bf16.vlgmr.msra.gmra.mrb[4].mxu0 %vm452_vm1, %v564_v13  ;;  %2126 = vmatpush3.bf16.xpose.msra.mxu1 %v2614_v9 }
  0x31   : > { %2118 = vmatpush3.bf16.msra.mxu0 %v2305_v14  ;;  %2121 = vmatprep.mubr.msk.bf16.mxu0 %vm2446_vm0, %v2445_v1  ;;  %v1972_v14 = vld [vmem:[%s2963_s3 + $0x2] ss:$0 sm:$0xff] }
  0x32   : > { %2119 = vmatprep.subr.bf16.mxu0 %v2445_v1  ;;  %2139 = vmatprep.subr.bf16.mxu1 %v2445_v1 }
  0x35   : > { %2120 = vmatpush3.bf16.msra.mxu0 %v2306_v18 }
  0x36   : > { %2131 = vmatprep.subr.bf16.mxu0 %v2445_v1 }
  0x37   : > { %2128 = vmatmul.mubr.msk.bf16.vlgmr.msra.gmra.mrb[8].mxu1 %vm452_vm1, %v1964_v20 }
  0x38   : > { %2122 = vmatmul.mubr.msk.bf16.vlgmr.msra.gmra.mrb[8].mxu0 %vm452_vm1, %v2597_v7  ;;  %2140 = vmatpush3.bf16.msra.mxu1 %v2308_v21 }
  0x39   : > { %2132 = vmatpush3.bf16.msra.mxu0 %v2307_v19  ;;  %2141 = vmatprep.subr.bf16.mxu1 %v2445_v1 }
  0x3a   : > { %2133 = vmatprep.subr.bf16.mxu0 %v2445_v1  ;;  %2143 = vmatprep.mubr.msk.bf16.mxu1 %vm2446_vm0, %v2445_v1 }
  0x3b   : > { %2135 = vmatprep.mubr.msk.bf16.mxu0 %vm2446_vm0, %v2445_v1 }
  0x3c   : > { %2142 = vmatpush3.bf16.msra.mxu1 %v2310_v23 }
  0x3d   : > { %2134 = vmatpush3.bf16.msra.mxu0 %v2309_v22  ;;  %2153 = vmatprep.subr.bf16.mxu1 %v2445_v1 }
  0x3e   : > { %2147 = vmatprep.subr.bf16.mxu0 %v2445_v1 }
  0x3f   : > { %2144 = vmatmul.mubr.msk.bf16.vlgmr.msra.gmra.mrb[12].mxu1 %vm452_vm1, %v2597_v7 }
  0x40   : > { %2136 = vmatmul.mubr.msk.bf16.vlgmr.msra.gmra.mrb[12].mxu0 %vm452_vm1, %v2597_v7  ;;  %2154 = vmatpush3.bf16.msra.mxu1 %v2311_v24 }
  0x41   : > { %2149 = vmatprep.mubr.msk.bf16.mxu0 %vm2446_vm0, %v2445_v1  ;;  %2157 = vmatprep.mubr.msk.bf16.mxu1 %vm2446_vm0, %v2445_v1 }
  0x42   : > { %2155 = vmatprep.subr.bf16.mxu1 %v2445_v1 }
  0x44   : > { %2156 = vmatpush3.bf16.msra.mxu1 %v2312_v25 }
  0x45   : > { %2169 = vmatprep.subr.bf16.mxu1 %v2445_v1 }
  0x46   : > { %2148 = vmatpush3.bf16.xpose.msra.mxu0 %v2614_v9 }
  0x47   : > { %2161 = vmatprep.subr.bf16.mxu0 %v2445_v1  ;;  %2158 = vmatmul.mubr.msk.bf16.vlgmr.msra.gmra.mrb[16].mxu1 %vm452_vm1, %v2597_v7 }
  0x48   : > { %2171 = vmatprep.mubr.msk.bf16.mxu1 %vm2446_vm0, %v2445_v1 }
  0x4d   : > { %2150 = vmatmul.mubr.msk.bf16.vlgmr.msra.gmra.mrb[16].mxu0 %vm452_vm1, %v1985_v26  ;;  %2170 = vmatpush3.bf16.xpose.msra.mxu1 %v2614_v9 }
  0x4e   : > { %2165 = vmatprep.mubr.msk.bf16.mxu0 %vm2446_vm0, %v2445_v1  ;;  %2181 = vmatprep.subr.bf16.mxu1 %v2445_v1 }
  0x4f   : > { %2162 = vmatpush3.bf16.msra.mxu0 %v2313_v28 }
  0x50   : > { %2163 = vmatprep.subr.bf16.mxu0 %v2445_v1 }
  0x53   : > { %2164 = vmatpush3.bf16.msra.mxu0 %v2314_v29 }
  0x54   : > { %2172 = vmatmul.mubr.msk.bf16.vlgmr.msra.gmra.mrb[20].mxu1 %vm452_vm1, %v2006_v27  ;;  %2175 = vmatprep.subr.bf16.mxu0 %v2445_v1 }
  0x55   : > { %2183 = vmatprep.mubr.msk.bf16.mxu1 %vm2446_vm0, %v2445_v1 }
  0x56   : > { %2166 = vmatmul.mubr.msk.bf16.vlgmr.msra.gmra.mrb[20].mxu0 %vm452_vm1, %v2597_v7 }
  0x57   : > { %2177 = vmatprep.mubr.msk.bf16.mxu0 %vm2446_vm0, %v2445_v1 }
  0x99   : > { %v569_v48 = vpop.permute.xlu0 %568 }
  0x9d   : > { %v759_v61 = vpop.permute.xlu0 %758 }
  0xf5   : > { %v556_v33 = vpop.f32.mrb[0].mxu1 }
  0xf6   : > { %v490_v32 = vpop.f32.mrb[0].mxu0  ;;  %v557_v36 = vadd.f32 %v1941_v31, %v556_v33  ;;  %v2101_v37 = vpop.f32.mrb[1].mxu1 }
  0xf7   : > { %v491_v34 = vadd.f32 %v1937_v30, %v490_v32  ;;  %v2093_v35 = vpop.f32.mrb[1].mxu0  ;;  %v559_v39 = vpop.f32.mrb[2].mxu1  ;;  %v1993_v32 = vld [vmem:[%s2963_s3 + $0x3] ss:$0 sm:$0xff] }
  0xf8   : > { %v493_v38 = vpop.f32.mrb[2].mxu0  ;;  %v562_v42 = vpack.c.bf16 %v557_v36, %v557_v36  ;;  %v2102_v43 = vpop.f32.mrb[3].mxu1 }
  0xf9   : > { %v496_v40 = vpack.c.bf16 %v491_v34, %v491_v34  ;;  %v2094_v41 = vpop.f32.mrb[3].mxu0 }
  0xfa   : > { %563 = vst.msk [vmem:[#allocation4] sm:$0xf] %vm497_vm3, %v562_v42 }
  0xfb   : > { %498 = vst.msk [vmem:[#allocation2] sm:$0xf] %vm497_vm3, %v496_v40  ;;  %v950_v40 = vpop.permute.xlu1 %949 }
  0xfd   : > { %v675_v45 = vpop.f32.mrb[4].mxu1 }
  0xfe   : > { %v676_v46 = vadd.f32 %v1951_v44, %v675_v45  ;;  %v2115_v47 = vpop.f32.mrb[5].mxu1 }
  0xff   : > { %v678_v49 = vpop.f32.mrb[6].mxu1  ;;  %v1141_v47 = vpop.permute.xlu1 %1140 }
 0x100   : > { %v681_v50 = vpack.c.bf16 %v676_v46, %v676_v46  ;;  %v2116_v51 = vpop.f32.mrb[7].mxu1 }
 0x101   : > { %v1274_v53 = vld [vmem:[#allocation4] sm:$0xf] }
 0x102   : > { %683 = vst.msk [vmem:[#allocation2 + $0x4] sm:$0xf] %vm497_vm3, %v681_v50  ;;  %v1279_v56 = vsel %vm1215_vm4, %v1274_v53, 0  ;;  %v1209_v17 = vld [vmem:[#allocation2] sm:$0xf] }
 0x103   : > { %v608_v52 = vpop.f32.mrb[4].mxu0  ;;  %2182 = vmatpush3.bf16.msra.mxu1 %v1279_v56 }
 0x104   : > { %v609_v54 = vadd.f32 %v608_v52, %v569_v48  ;;  %v2107_v55 = vpop.f32.mrb[5].mxu0  ;;  %2193 = vmatprep.subr.bf16.mxu1 %v2445_v1 }
 0x105   : > { %v611_v57 = vpop.f32.mrb[6].mxu0 }
 0x106   : > { %v614_v58 = vpack.c.bf16 %v609_v54, %v609_v54  ;;  %v2108_v59 = vpop.f32.mrb[7].mxu0 }
 0x108   : > { %615 = vst.msk [vmem:[#allocation3] sm:$0xf] %vm497_vm3, %v614_v58 }
 0x109   : > { %v2011_v33 = vld [vmem:[#allocation2 + $0x4] sm:$0xf] }
 0x10a   : > { %v798_v0 = vpop.f32.mrb[8].mxu1 }
 0x10b   : > { %v743_v62 = vpop.f32.mrb[8].mxu0  ;;  %v799_v3 = vadd.f32 %v798_v0, %v759_v61  ;;  %v2129_v4 = vpop.f32.mrb[9].mxu1 }
 0x10c   : > { %v744_v63 = vadd.f32 %v1960_v60, %v743_v62  ;;  %v2123_v2 = vpop.f32.mrb[9].mxu0  ;;  %v801_v7 = vpop.f32.mrb[10].mxu1  ;;  %v2002_v60 = vld [vmem:[%s2947_s7 + $0x3] ss:$0 sm:$0xff]  ;;  %v1193_v4 = vlaneseq }
 0x10d   : > { %v746_v5 = vpop.f32.mrb[10].mxu0  ;;  %v804_v9 = vpack.c.bf16 %v799_v3, %v799_v3  ;;  %v2130_v11 = vpop.f32.mrb[11].mxu1  ;;  %v1191_v7 = vmul.f32 -1e+30, %v2620_v10 }
 0x10e   : > { %v749_v6 = vpack.c.bf16 %v744_v63, %v744_v63  ;;  %v2124_v8 = vpop.f32.mrb[11].mxu0  ;;  %v2791_v5 = vshrl.u32 %v1193_v4, 7 }
 0x10f   : > { %v1210_v12 = vld [vmem:[#allocation3] sm:$0xf]  ;;  %806 = vst.msk [vmem:[#allocation3 + $0x4] sm:$0xf] %vm497_vm3, %v804_v9 }
 0x110   : > { %751 = vst.msk [vmem:[#allocation4 + $0x4] sm:$0xf] %vm497_vm3, %v749_v6  ;;  %v1217_v13 = vsel %vm1215_vm4, %v1210_v12, 0  ;;  %v1195_v6 = vsub.s32 0, %v2791_v5 }
 0x111   : > { %2176 = vmatpush3.bf16.msra.mxu0 %v1217_v13 }
 0x112   : > { %2187 = vmatprep.subr.bf16.mxu0 %v2445_v1  ;;  %v934_v19 = vpop.f32.mrb[12].mxu1  ;;  %v1196_v8 = vrot.slane %v1191_v7, %v1195_v6 }
 0x113   : > { %v866_v18 = vpop.f32.mrb[12].mxu0  ;;  %v935_v22 = vadd.f32 %v1981_v16, %v934_v19  ;;  %v2145_v23 = vpop.f32.mrb[13].mxu1 }
 0x114   : > { %2178 = vmatmul.mubr.msk.bf16.vlgmr.msra.gmra.mrb[24].mxu0 %vm1211_vm5, %v1209_v17  ;;  %v867_v20 = vadd.f32 %v1972_v14, %v866_v18  ;;  %v2137_v21 = vpop.f32.mrb[13].mxu0  ;;  %v937_v26 = vpop.f32.mrb[14].mxu1 }
 0x115   : > { %v869_v24 = vpop.f32.mrb[14].mxu0  ;;  %2189 = vmatprep.mubr.msk.bf16.mxu0 %vm2446_vm0, %v2445_v1  ;;  %v940_v28 = vpack.c.bf16 %v935_v22, %v935_v22  ;;  %v2146_v29 = vpop.f32.mrb[15].mxu1 }
 0x116   : > { %v872_v25 = vpack.c.bf16 %v867_v20, %v867_v20  ;;  %v2138_v27 = vpop.f32.mrb[15].mxu0  ;;  %v1329_v30 = vld [vmem:[#allocation3 + $0x4] sm:$0xf] }
 0x117   : > { %942 = vst.msk [vmem:[#allocation4 + $0x8] sm:$0xf] %vm497_vm3, %v940_v28  ;;  %v1334_v31 = vsel %vm1215_vm4, %v1329_v30, 0 }
 0x118   : > { %874 = vst.msk [vmem:[#allocation2 + $0x8] sm:$0xf] %vm497_vm3, %v872_v25  ;;  %2188 = vmatpush3.bf16.msra.mxu0 %v1334_v31 }
 0x119   : > { %2199 = vmatprep.subr.bf16.mxu0 %v2445_v1 }
 0x11a   : > { %v1057_v34 = vpop.f32.mrb[16].mxu1 }
 0x11b   : > { %v1058_v35 = vadd.f32 %v1993_v32, %v1057_v34  ;;  %v2159_v36 = vpop.f32.mrb[17].mxu1 }
 0x11c   : > { %2190 = vmatmul.mubr.msk.bf16.vlgmr.msra.gmra.mrb[28].mxu0 %vm1211_vm5, %v2011_v33  ;;  %v1060_v37 = vpop.f32.mrb[18].mxu1 }
 0x11d   : > { %2201 = vmatprep.mubr.msk.bf16.mxu0 %vm2446_vm0, %v2445_v1  ;;  %v1063_v38 = vpack.c.bf16 %v1058_v35, %v1058_v35  ;;  %v2160_v39 = vpop.f32.mrb[19].mxu1 }
 0x11f   : > { %1065 = vst.msk [vmem:[#allocation2 + $0xc] sm:$0xf] %vm497_vm3, %v1063_v38  ;;  %v2015_v56 = vld [vmem:[#allocation2 + $0x8] sm:$0xf] }
 0x120   : > { %v989_v41 = vpop.f32.mrb[16].mxu0 }
 0x121   : > { %v990_v42 = vadd.f32 %v989_v41, %v950_v40  ;;  %v2151_v43 = vpop.f32.mrb[17].mxu0 }
 0x122   : > { %v992_v44 = vpop.f32.mrb[18].mxu0 }
 0x123   : > { %v995_v45 = vpack.c.bf16 %v990_v42, %v990_v42  ;;  %v2152_v46 = vpop.f32.mrb[19].mxu0 }
 0x125   : > { %997 = vst.msk [vmem:[#allocation3 + $0x8] sm:$0xf] %vm497_vm3, %v995_v45 }
 0x126   : > { %v2019_v59 = vld [vmem:[#allocation2 + $0xc] sm:$0xf] }
 0x127   : > { %v1180_v48 = vpop.f32.mrb[20].mxu1 }
 0x128   : > { %v1181_v49 = vadd.f32 %v1180_v48, %v1141_v47  ;;  %v2173_v50 = vpop.f32.mrb[21].mxu1 }
 0x129   : > { %v1183_v51 = vpop.f32.mrb[22].mxu1  ;;  %v1125_v61 = vpop.f32.mrb[20].mxu0 }
 0x12a   : > { %v1186_v52 = vpack.c.bf16 %v1181_v49, %v1181_v49  ;;  %v2174_v53 = vpop.f32.mrb[23].mxu1  ;;  %v1126_v62 = vadd.f32 %v2002_v60, %v1125_v61  ;;  %v2167_v63 = vpop.f32.mrb[21].mxu0  ;;  %v1394_v60 = vld [vmem:[#allocation4 + $0x4] sm:$0xf] }
 0x12b   : > { %v1128_v0 = vpop.f32.mrb[22].mxu0 }
 0x12c   : > { %v1455_v54 = vld [vmem:[#allocation3 + $0x8] sm:$0xf]  ;;  %1188 = vst.msk [vmem:[#allocation3 + $0xc] sm:$0xf] %vm497_vm3, %v1186_v52  ;;  %v1131_v2 = vpack.c.bf16 %v1126_v62, %v1126_v62  ;;  %v2168_v3 = vpop.f32.mrb[23].mxu0 }
 0x12d   : > { %v1460_v55 = vsel %vm1215_vm4, %v1455_v54, 0  ;;  %v1520_v3 = vld [vmem:[#allocation4 + $0x8] sm:$0xf] }
 0x12e   : > { %2200 = vmatpush3.bf16.msra.mxu0 %v1460_v55  ;;  %1133 = vst.msk [vmem:[#allocation4 + $0xc] sm:$0xf] %vm497_vm3, %v1131_v2  ;;  %v1203_v55 = vrot.slane %v2637_v15, %v1195_v6  ;;  %v1399_v15 = vsel %vm1215_vm4, %v1394_v60, 0  ;;  %v1525_v6 = vsel %vm1215_vm4, %v1520_v3, 0 }
 0x12f   : > { %2211 = vmatprep.subr.bf16.mxu0 %v2445_v1 }
 0x130   : > { %vm1204_vm6 = vcmp.eq.s32.totalorder %v1203_v55, 1 }
 0x131   : > { %2202 = vmatmul.mubr.msk.bf16.vlgmr.msra.gmra.mrb[32].mxu0 %vm1211_vm5, %v2015_v56 }
 0x132   : > { %2213 = vmatprep.mubr.msk.bf16.mxu0 %vm2446_vm0, %v2445_v1 }
 0x133   : > { %v1581_v57 = vld [vmem:[#allocation3 + $0xc] sm:$0xf] }
 0x134   : > { %v1586_v58 = vsel %vm1215_vm4, %v1581_v57, 0 }
 0x135   : > { %2212 = vmatpush3.bf16.msra.mxu0 %v1586_v58 }
 0x136   : > { %2223 = vmatprep.subr.bf16.mxu0 %v2445_v1 }
 0x139   : > { %2214 = vmatmul.mubr.msk.bf16.vlgmr.msra.gmra.mrb[36].mxu0 %vm1211_vm5, %v2019_v59 }
 0x13a   : > { %2227 = vmatprep.mubr.msk.bf16.mxu0 %vm2446_vm0, %v2445_v1 }
 0x1e7   : > { %v1253_v9 = vpop.f32.mrb[24].mxu0 }
 0x1e8   : > { %v1254_v11 = vadd.f32 %v1253_v9, %v1196_v8  ;;  %v2179_v12 = vpop.f32.mrb[25].mxu0 }
 0x1e9   : > { %v1256_v13 = vpop.f32.mrb[26].mxu0 }
 0x1ea   : > { %v2180_v14 = vpop.f32.mrb[27].mxu0  ;;  %v1259_v16 = vsel %vm1211_vm5, %v1254_v11, -inf  ;;  %v1646_v13 = vld [vmem:[#allocation4 + $0xc] sm:$0xf] }
 0x1eb   : > { %1260 = vmax.xlane.f32.xlu0 %v1259_v16 }
 0x1ef   : > { %v1370_v17 = vpop.f32.mrb[28].mxu0 }
 0x1f0   : > { %v1371_v18 = vadd.f32 %v1370_v17, %v1196_v8  ;;  %v2191_v19 = vpop.f32.mrb[29].mxu0 }
 0x1f1   : > { %v1373_v20 = vpop.f32.mrb[30].mxu0 }
 0x1f2   : > { %v2192_v21 = vpop.f32.mrb[31].mxu0  ;;  %v1376_v22 = vsel %vm1211_vm5, %v1371_v18, -inf }
 0x1f3   : > { %1377 = vmax.xlane.f32.xlu1 %v1376_v22 }
 0x204   : > { %v1496_v23 = vpop.f32.mrb[32].mxu0 }
 0x205   : > { %v1497_v24 = vadd.f32 %v1496_v23, %v1196_v8  ;;  %v2203_v10 = vpop.f32.mrb[33].mxu0 }
 0x206   : > { %v1499_v25 = vpop.f32.mrb[34].mxu0 }
 0x207   : > { %v2204_v26 = vpop.f32.mrb[35].mxu0  ;;  %v1502_v27 = vsel %vm1211_vm5, %v1497_v24, -inf }
 0x208   : > { %1503 = vmax.xlane.f32.xlu0 %v1502_v27 }
 0x20c   : > { %v1622_v28 = vpop.f32.mrb[36].mxu0 }
 0x20d   : > { %v1623_v29 = vadd.f32 %v1622_v28, %v1196_v8  ;;  %v2215_v30 = vpop.f32.mrb[37].mxu0 }
 0x20e   : > { %v1625_v31 = vpop.f32.mrb[38].mxu0 }
 0x20f   : > { %v2216_v32 = vpop.f32.mrb[39].mxu0  ;;  %v1628_v33 = vsel %vm1211_vm5, %v1623_v29, -inf }
 0x210   : > { %1629 = vmax.xlane.f32.xlu0 %v1628_v33 }
 0x278   : > { %v1261_v34 = vpop.xlane.xlu0 %1260 }
 0x279   : > { %v1262_v35 = vsub.f32 %v1254_v11, %v1261_v34 }
 0x27b   : > { %v1263_v36 = vmul.f32 1.442695, %v1262_v35 }
 0x27d   : > { %2317 = vpow2.f32 %v1263_v36  ;;  %v2315_v36 = vld [vmem:[%s2948_s8] sm:$0xff]  }
 0x27e   : > { %2224 = vmatpush3.bf16.msra.mxu0 %v2315_v36 }
 0x27f   : > { %2225 = vmatprep.subr.bf16.mxu0 %v2445_v1 }
 0x280   : > { %v1378_v37 = vpop.xlane.xlu1 %1377 }
 0x281   : > { %v1379_v38 = vsub.f32 %v1371_v18, %v1378_v37  ;;  %v1651_v18 = vsel %vm1215_vm4, %v1646_v13, 0 }
 0x283   : > { %v1380_v39 = vmul.f32 1.442695, %v1379_v38 }
 0x285   : > { %2319 = vpow2.f32 %v1380_v39 }
 0x287   : > { %v2318_v40 = vpop.eup %2317 }
 0x288   : > { %v1265_v41 = vsel %vm1211_vm5, %v2318_v40, 0.0 }
 0x289   : > { %1266 = vadd.xlane.f32.xlu1 %v1265_v41 }
 0x28f   : > { %v2320_v42 = vpop.eup %2319 }
 0x290   : > { %v1382_v43 = vsel %vm1211_vm5, %v2320_v42, 0.0 }
 0x291   : > { %1383 = vadd.xlane.f32.xlu0 %v1382_v43 }
 0x295   : > { %v1504_v44 = vpop.xlane.xlu0 %1503 }
 0x296   : > { %v1505_v45 = vsub.f32 %v1497_v24, %v1504_v44 }
 0x298   : > { %v1506_v46 = vmul.f32 1.442695, %v1505_v45 }
 0x29a   : > { %2321 = vpow2.f32 %v1506_v46 }
 0x29d   : > { %v1630_v47 = vpop.xlane.xlu0 %1629 }
 0x29e   : > { %v1631_v48 = vsub.f32 %v1623_v29, %v1630_v47 }
 0x2a0   : > { %v1632_v49 = vmul.f32 1.442695, %v1631_v48 }
 0x2a2   : > { %2323 = vpow2.f32 %v1632_v49 }
 0x2a4   : > { %v2322_v50 = vpop.eup %2321 }
 0x2a5   : > { %v1508_v51 = vsel %vm1211_vm5, %v2322_v50, 0.0 }
 0x2a6   : > { %1509 = vadd.xlane.f32.xlu1 %v1508_v51 }
 0x2ac   : > { %v2324_v52 = vpop.eup %2323 }
 0x2ad   : > { %v1634_v53 = vsel %vm1211_vm5, %v2324_v52, 0.0 }
 0x2ae   : > { %1635 = vadd.xlane.f32.xlu0 %v1634_v53 }
 0x316   : > { %v1267_v54 = vpop.xlane.xlu1 %1266 }
 0x317   : > { %2325 = vrcp.f32 %v1267_v54 }
 0x31e   : > { %v1384_v56 = vpop.xlane.xlu0 %1383 }
 0x31f   : > { %2327 = vrcp.f32 %v1384_v56 }
 0x321   : > { %v2326_v57 = vpop.eup %2325 }
 0x322   : > { %v1270_v58 = vmul.f32 %v2326_v57, %v2318_v40  ;;  %v2316_v40 = vld [vmem:[%s2948_s8 + $0x8] sm:$0xff]  }
 0x323   : > { %2226 = vmatpush3.bf16.msra.mxu0 %v2316_v40 }
 0x324   : > { %v1271_v59 = vsel %vm1204_vm6, %v1270_v58, 0.0 }
 0x325   : > { %v1273_v61 = vpack.c.bf16 %v1271_v59, %v1271_v59  ;;  %1272 = vst.msk [vmem:[%s2811_s0] sm:$0xff] %vm1211_vm5, %v1271_v59 }
 0x327   : > { %2184 = vmatmul.mubr.msk.bf16.vlgmr.msra.gmra.mrb[24].mxu1 %vm1211_vm5, %v1273_v61 }
 0x328   : > { %2194 = vmatpush3.bf16.msra.mxu1 %v1399_v15  ;;  %2195 = vmatprep.mubr.msk.bf16.mxu1 %vm2446_vm0, %v2445_v1 }
 0x329   : > { %2205 = vmatprep.subr.bf16.mxu1 %v2445_v1  ;;  %v2328_v62 = vpop.eup %2327 }
 0x32a   : > { %v1387_v63 = vmul.f32 %v2328_v62, %v2320_v42 }
 0x32c   : > { %v1389_v0 = vld [vmem:[%s2811_s0] sm:$0xff]  ;;  %v1388_v2 = vsel %vm1204_vm6, %v1387_v63, 0.0 }
 0x32d   : > { %v1392_v4 = vpack.c.bf16 %v1388_v2, %v1388_v2  ;;  %v1390_v5 = vadd.f32 %v1389_v0, %v1388_v2 }
 0x32f   : > { %2196 = vmatmul.mubr.msk.bf16.vlgmr.msra.gmra.mrb[28].mxu1 %vm1211_vm5, %v1392_v4  ;;  %1391 = vst.msk [vmem:[%s2811_s0] sm:$0xff] %vm1211_vm5, %v1390_v5 }
 0x330   : > { %2206 = vmatpush3.bf16.msra.mxu1 %v1525_v6  ;;  %2207 = vmatprep.mubr.msk.bf16.mxu1 %vm2446_vm0, %v2445_v1 }
 0x331   : > { %2217 = vmatprep.subr.bf16.mxu1 %v2445_v1 }
 0x333   : > { %v1510_v7 = vpop.xlane.xlu1 %1509 }
 0x334   : > { %2329 = vrcp.f32 %v1510_v7 }
 0x336   : > { %v1515_v14 = vld [vmem:[%s2811_s0] sm:$0xff] }
 0x33b   : > { %v1636_v8 = vpop.xlane.xlu0 %1635 }
 0x33c   : > { %2331 = vrcp.f32 %v1636_v8 }
 0x33e   : > { %v2330_v9 = vpop.eup %2329 }
 0x33f   : > { %v1513_v11 = vmul.f32 %v2330_v9, %v2322_v50 }
 0x341   : > { %v1514_v12 = vsel %vm1204_vm6, %v1513_v11, 0.0 }
 0x342   : > { %v1518_v16 = vpack.c.bf16 %v1514_v12, %v1514_v12  ;;  %v1516_v17 = vadd.f32 %v1515_v14, %v1514_v12 }
 0x344   : > { %2208 = vmatmul.mubr.msk.bf16.vlgmr.msra.gmra.mrb[32].mxu1 %vm1211_vm5, %v1518_v16  ;;  %1517 = vst.msk [vmem:[%s2811_s0] sm:$0xff] %vm1211_vm5, %v1516_v17 }
 0x345   : > { %2218 = vmatpush3.bf16.msra.mxu1 %v1651_v18  ;;  %2219 = vmatprep.mubr.msk.bf16.mxu1 %vm2446_vm0, %v2445_v1 }
 0x346   : > { %v2332_v19 = vpop.eup %2331 }
 0x347   : > { %v1639_v20 = vmul.f32 %v2332_v19, %v2324_v52 }
 0x349   : > { %v1640_v21 = vsel %vm1204_vm6, %v1639_v20, 0.0 }
 0x34a   : > { %v1644_v22 = vpack.c.bf16 %v1640_v21, %v1640_v21 }
 0x34b   : > { %v1641_v23 = vld [vmem:[%s2811_s0] sm:$0xff] }
 0x34c   : > { %v1642_v24 = vadd.f32 %v1641_v23, %v1640_v21  ;;  %2220 = vmatmul.mubr.msk.bf16.vlgmr.msra.gmra.mrb[36].mxu1 %vm1211_vm5, %v1644_v22 }
 0x34e   : > { %1643 = vst.msk [vmem:[%s2811_s0] sm:$0xff] %vm1211_vm5, %v1642_v24 }
 0x355   : > { %v1702_v10 = vld [vmem:[%s2811_s0] sm:$0xff] }
 0x356   : > { %v1703_v25 = vmul.f32 0.25, %v1702_v10 }
 0x358   : > { %1704 = vst.msk [vmem:[%s2811_s0] sm:$0xff] %vm1211_vm5, %v1703_v25 }
 0x3fa   : > { %v1315_v26 = vpop.f32.mrb[24].mxu1 }
 0x3fb   : > { %v1321_v27 = vpack.c.bf16 %v1315_v26, %v1315_v26  ;;  %v2185_v28 = vpop.f32.mrb[25].mxu1 }
 0x3fc   : > { %v1318_v29 = vpop.f32.mrb[26].mxu1 }
 0x3fd   : > { %1323 = vst.msk [vmem:[#allocation5] sm:$0xf] %vm497_vm3, %v1321_v27  ;;  %v2186_v30 = vpop.f32.mrb[27].mxu1 }
 0x402   : > { %v1435_v31 = vpop.f32.mrb[28].mxu1 }
 0x403   : > { %v2033_v32 = vpack.c.bf16 %v1435_v31, %v1435_v31  ;;  %v2197_v33 = vpop.f32.mrb[29].mxu1 }
 0x404   : > { %v1438_v34 = vpop.f32.mrb[30].mxu1 }
 0x405   : > { %1445 = vrot.lane.b32.xlu1 %v2033_v32, %s2448_s28  ;;  %v2198_v35 = vpop.f32.mrb[31].mxu1  ;;  %s2953_s28 = sshll.u32 %s2435_s20, 7 }
 0x406   : > { %s2860_s13 = scalar_lea.hbm %s2951_s11, %s2953_s28 }
 0x417   : > { %v1561_v37 = vpop.f32.mrb[32].mxu1 }
 0x418   : > { %v2034_v38 = vpack.c.bf16 %v1561_v37, %v1561_v37  ;;  %v2209_v39 = vpop.f32.mrb[33].mxu1 }
 0x419   : > { %v1564_v41 = vpop.f32.mrb[34].mxu1 }
 0x41a   : > { %1571 = vrot.lane.b32.xlu0 %v2034_v38, %s2449_s15  ;;  %v2210_v42 = vpop.f32.mrb[35].mxu1  ;;  %s1780_s15 = scalar_lea.sflag [#allocation9], %s2804_s23 }
 0x41f   : > { %v1687_v43 = vpop.f32.mrb[36].mxu1 }
 0x420   : > { %v2035_v44 = vpack.c.bf16 %v1687_v43, %v1687_v43  ;;  %v2221_v45 = vpop.f32.mrb[37].mxu1 }
 0x421   : > { %v1690_v46 = vpop.f32.mrb[38].mxu1 }
 0x422   : > { %1697 = vrot.lane.b32.xlu1 %v2035_v44, %s2450_s16  ;;  %v2222_v47 = vpop.f32.mrb[39].mxu1  ;;  %s2333_s16 = scalar_lea.vmem %s1809_s14, 128 }
 0x423   : > { %p2334_p12 = scmp.ne.s32.totalorder %s1809_s14, %s2333_s16  ;;  %p2341_p2 = scmp.lt.s32.totalorder %s2339_s2, %s2333_s16 }
 0x425   : > { %p2335_p13 = pnand %p2334_p12, %p2553_p4  ;;  %p2342_p3 = por %p2341_p2, %p2340_p1 }
 0x427   : > { %p2336_p0 = pneg %p2335_p13 }
 0x429   : > { %p2343_p5 = pnand %p2342_p3, %p2336_p0 }
 0x477   : > { %v1446_v48 = vpop.permute.xlu1 %1445 }
 0x478   : > { %1449 = vst.msk [vmem:[#allocation5] sm:$0xf] %vm1448_vm7, %v1446_v48 }
 0x48c   : > { %v1572_v1 = vpop.permute.xlu0 %1571 }
 0x48d   : > { %1575 = vst.msk [vmem:[#allocation5] sm:$0xf] %vm1574_vm8, %v1572_v1 }
 0x494   : > { %v1698_v49 = vpop.permute.xlu1 %1697 }
 0x495   : > { %1701 = vst.msk [vmem:[#allocation5] sm:$0xf] %vm1700_vm9, %v1698_v49 }
 0x49c   : > { %v1705_v50 = vld [vmem:[#allocation5] sm:$0xf] }
 0x49d   : > { %2228 = vmatmul.mubr.msk.bf16.vlgmr.msra.gmra.mrb[40].mxu0 %vm452_vm1, %v1705_v50 }
 0x49e   : > { %2346 = shalt.err (!%p2343_p5)
}
 0x49f   : > { %s2347_s0 = scalar_lea.hbm %s2860_s13, 128  ;;  %s2351_s24 = scalar_lea.hbm %s2951_s11, 256 }
 0x4a0   : > { %p2348_p6 = scmp.ne.s32.totalorder %s2860_s13, %s2347_s0  ;;  %p2352_p10 = scmp.lt.u32.totalorder %s2860_s13, %s2951_s11 }
 0x4a1   : > { %p2353_p11 = scmp.lt.u32.totalorder %s2351_s24, %s2347_s0  ;;  %p2355_p13 = scmp.lt.u32.totalorder %s2347_s0, %s2860_s13 }
 0x4a2   : > { %p2349_p7 = pnand %p2348_p6, %p2553_p4 }
 0x4a3   : > { %p2354_p12 = por %p2353_p11, %p2352_p10 }
 0x4a4   : > { %p2350_p9 = pneg %p2349_p7 }
 0x4a5   : > { %p2356_p0 = por %p2355_p13, %p2354_p12 }
 0x4a7   : > { %p2357_p1 = pnand %p2356_p0, %p2350_p9 }
 0x4a9   : > { %2360 = shalt.err (!%p2357_p1)
}
 0x4aa   : > { %2232 = dma.vmem_to_hbm [thread:$0]  (%p2553_p4), %s1809_s14, 128, %s2860_s13, %s1780_s15   ;;  %v2023_v51 = vld [vmem:[%s2949_s9] ss:$0 sm:$0xff] }
 0x4ab   : > { %s2964_s28 = sshll.u32 %s2804_s23, 3  ;;  %s2965_s0 = sshll.u32 %s2435_s20, 7 }
 0x4ac   : > { %s408_s26 = scalar_lea.vmem [#allocation6], %s2964_s28  ;;  %s2891_s3 = scalar_lea.hbm %s2950_s10, %s2965_s0 }
 0x4ad   : > { %s1794_s12 = sshll.u32 %s408_s26, 4  ;;  %s1775_s13 = scalar_lea.sflag [#allocation7], %s2804_s23  ;;  %s2893_s12 = int_to_ptr.vmem [resolvable:$true] %s1794_s12 }
 0x4ae   : > { %s2361_s14 = scalar_lea.vmem %s2893_s12, 128  ;;  %s2452_s20 = smov [#allocation6]  }
 0x4af   : > { %p2362_p2 = scmp.ne.s32.totalorder %s2893_s12, %s2361_s14  ;;  %s2365_s15 = sshll.u32 %s2452_s20, 4  ;;  %s2366_s15 = int_to_ptr.vmem [resolvable:$false] %s2365_s15 }
 0x4b0   : > { %s2367_s2 = scalar_lea.vmem %s2366_s15, 256  ;;  %p2368_p6 = scmp.lt.s32.totalorder %s2893_s12, %s2366_s15 }
 0x4b1   : > { %p2363_p3 = pnand %p2362_p2, %p2553_p4  ;;  %p2369_p7 = scmp.lt.s32.totalorder %s2367_s2, %s2361_s14 }
 0x4b3   : > { %p2364_p5 = pneg %p2363_p3  ;;  %p2370_p9 = por %p2369_p7, %p2368_p6 }
 0x4b5   : > { %p2371_p10 = pnand %p2370_p9, %p2364_p5 }
 0x570   : > { %v1767_v52 = vpop.f32.mrb[40].mxu0 }
 0x571   : > { %v1768_v53 = vadd.f32 %v2023_v51, %v1767_v52  ;;  %v2229_v54 = vpop.f32.mrb[41].mxu0 }
 0x572   : > { %v1770_v55 = vpop.f32.mrb[42].mxu0 }
 0x573   : > { %v2230_v56 = vpop.f32.mrb[43].mxu0  ;;  %1773 = vst.msk [vmem:[%s408_s26] sm:$0xff] %vm452_vm1, %v1768_v53 }
 0x574   : > { %2374 = shalt.err (!%p2371_p10)
}
 0x575   : > { %s2375_s23 = scalar_lea.hbm %s2891_s3, 128  ;;  %s2379_s26 = scalar_lea.hbm %s2950_s10, 256 }
 0x576   : > { %p2376_p11 = scmp.ne.s32.totalorder %s2891_s3, %s2375_s23  ;;  %p2380_p0 = scmp.lt.u32.totalorder %s2891_s3, %s2950_s10 }
 0x577   : > { %p2381_p1 = scmp.lt.u32.totalorder %s2379_s26, %s2375_s23  ;;  %p2383_p3 = scmp.lt.u32.totalorder %s2375_s23, %s2891_s3 }
 0x578   : > { %p2377_p12 = pnand %p2376_p11, %p2553_p4 }
 0x579   : > { %p2382_p2 = por %p2381_p1, %p2380_p0 }
 0x57a   : > { %p2378_p13 = pneg %p2377_p12 }
 0x57b   : > { %p2384_p5 = por %p2383_p3, %p2382_p2 }
 0x57d   : > { %p2385_p6 = pnand %p2384_p5, %p2378_p13 }
 0x57f   : > { %2388 = shalt.err (!%p2385_p6)
}
 0x580   : > { %2231 = dma.vmem_to_hbm [thread:$0]  (%p2553_p4), %s2893_s12, 128, %s2891_s3, %s1775_s13  }
 0x581 PF: > { %p2242_p7 = scmp.ge.s32.totalorder %s2443_s22, 2  ;;  %s1820_s1 = sand.u32 1, %s2423_s17  }
 0x582   : > { %s1821_s14 = scalar_lea.sflag [#allocation7], %s1820_s1 }
 0x583   : > { %p2236_p9 = pnand %p2242_p7, %p2560_p8 }
 0x585   : > { %2414 = dma.done.wait (!%p2236_p9), %s1821_s14, 128  }
 0x586   : > { %2416 = vsyncadd (!%p2236_p9), %s1821_s14, 4294967168  ;;  %s1830_s20 = scalar_lea.sflag [#allocation9], %s1820_s1 }
 0x587   : > { %2418 = dma.done.wait (!%p2236_p9), %s1830_s20, 128  }
 0x588   : > { %2420 = vsyncadd (!%p2236_p9), %s1830_s20, 4294967168  ;;  %s28_s22 = sadd.s32 1, %s2443_s22   ;;  %s2966_s17 = smov %s2427_s18 }
 0x589   : > { %p25_p10 = scmp.ge.s32.totalorder %s28_s22, 4   ;;  %s2967_s18 = smov %s2431_s19 }
 0x58a   : > { %s2968_s19 = smov %s2566_s30  ;;  %s2969_s20 = smov %s2439_s21 }
 0x58b   : > { %s2970_s21 = smov %s2972_s25  ;;  %27 = sbr.rel (!%p25_p10) target bundleno = 11 (0xb), region = 156 }
 0x592   :  { %1835 = vsyncpa [#allocation7], 1 }
 0x593   :  { %1837 = vsyncpa [#allocation7 + $0x1], 1 }
 0x594   :  { %1838 = vsyncpa [#allocation9], 1 }
 0x595   :  { %1840 = vsyncpa [#allocation9 + $0x1], 1 }

</bundles_post_ra>
